<compile_context>
chip_gen: v6e
topology: v6e:2x2x1
jax: 0.10.0
libtpu: 0.0.40
codegen_flags: <defaults>
</compile_context>

<pallas_src>
import functools

import jax
import jax.numpy as jnp
from jax.experimental import pallas as pl
from jax.experimental.pallas import tpu as pltpu


def _round_up(x, m):
    return ((x + m - 1) // m) * m


def elmo_head_kernel(ids_ref, w1_ref, bh_ref, wlin_ref, blin_ref,
                     logits_ref, probs_ref, counts_t_ref,
                     *, tokens_per_example, num_classes):
    """Fused: bag-of-chars counts (MXU one-hot) -> folded ELMo proj -> linear -> softmax.

    ids_ref      : (1, 1, TCHUNK)   int32 flattened char ids (lane-dense row), -1 = pad
    w1_ref       : (V_pad, H_pad)   bf16   char_emb @ w_elmo (folded in wrapper)
    bh_ref       : (1, H_pad)       f32    S * b_elmo (pre-scaled in wrapper)
    wlin_ref     : (H_pad, C_pad)   bf16
    blin_ref     : (1, C_pad)       f32
    logits_ref   : (B_pad, C_pad)   f32
    probs_ref    : (B_pad, C_pad)   f32
    counts_t_ref : (V_pad, B_pad)   f32    scratch accumulator, persists across grid steps
    """
    step = pl.program_id(0)
    tchunk = ids_ref.shape[-1]
    v_pad, b_pad = counts_t_ref.shape

    @pl.when(step == 0)
    def _():
        counts_t_ref[...] = jnp.zeros_like(counts_t_ref)

    # ---- per-chunk: accumulate per-example char-id counts on the MXU -------
    ids_row = ids_ref[0]                                        # (1, TCHUNK) int32, lane-dense
    # Transposed one-hot (vocab on sublanes, tokens on lanes), built in bf16
    # directly from a small iota: no (TT, V_pad) iota, no f32 intermediate.
    v_iota = jax.lax.broadcasted_iota(jnp.int32, (v_pad, 1), 0)
    onehot_t = (ids_row == v_iota).astype(jnp.bfloat16)         # (V_pad, TCHUNK)

    # Segment selector: sel_t[t, b] = 1 iff global token t belongs to example b.
    base = step * tchunk
    tok = jax.lax.broadcasted_iota(jnp.int32, (tchunk, 1), 0) + base
    lo = jax.lax.broadcasted_iota(jnp.int32, (1, b_pad), 1) * tokens_per_example
    sel_t = ((tok >= lo) & (tok < lo + tokens_per_example)).astype(jnp.bfloat16)  # (TCHUNK, B_pad)

    # counts_T[v, b] += #{t in chunk : ids[t] == v and t in example b}
    # (0/1 bf16 products with f32 accumulation -> exact integer counts)
    counts_t_ref[...] += jnp.dot(onehot_t, sel_t,
                                 preferred_element_type=jnp.float32)

    # ---- last chunk: folded ELMo projection + linear head + softmax --------
    @pl.when(step == pl.num_programs(0) - 1)
    def _():
        # h = sum_s elmo(x)[:, s, :] == counts @ (char_emb @ w_elmo) + S * b_elmo.
        # dot_general contracts the vocab axis of counts_T directly (tiny
        # transposed-LHS matmul); counts stay f32 because integer counts can
        # exceed bf16's exact range (256).
        h = jax.lax.dot_general(
            counts_t_ref[...], w1_ref[...].astype(jnp.float32),
            dimension_numbers=(((0,), (0,)), ((), ())),
            preferred_element_type=jnp.float32) + bh_ref[...]        # (B_pad, H_pad)

        # o = self.linear(h)
        o = jnp.dot(h.astype(jnp.bfloat16), wlin_ref[...],
                    preferred_element_type=jnp.float32) + blin_ref[...]  # (B_pad, C_pad)
        logits_ref[...] = o

        # softmax over the real classes only (padded lanes masked)
        c_iota = jax.lax.broadcasted_iota(jnp.int32, o.shape, 1)
        o_m = jnp.where(c_iota < num_classes, o, -1e30)
        m = jnp.max(o_m, axis=-1, keepdims=True)
        ex = jnp.exp(o_m - m)
        denom = jnp.sum(ex, axis=-1, keepdims=True)
        probs_ref[...] = ex * pl.reciprocal(denom, approx=True)


def prepare_params(params, seq_len):
    """One-time weight prep: fold char_emb @ w_elmo, pre-scale b_elmo by S, pad, cast.

    Hoisted out of the per-call forward path per perf review.  The fold is only
    valid while the ELMo stack is the linear stand-in.
    """
    char_emb = params["char_emb"].astype(jnp.float32)   # (V, E)
    w_elmo = params["w_elmo"].astype(jnp.float32)       # (E, H)
    b_elmo = params["b_elmo"].astype(jnp.float32)       # (1, H)
    w_lin_t = params["w_lin_t"].astype(jnp.float32)     # (H, C)
    b_lin = params["b_lin"].astype(jnp.float32)         # (1, C)

    V, _ = char_emb.shape
    H = w_elmo.shape[1]
    C = w_lin_t.shape[1]
    LANE = 128
    V_pad = _round_up(V, LANE)
    H_pad = _round_up(H, LANE)
    C_pad = _round_up(C, LANE)

    w1 = char_emb @ w_elmo          # (V, H)  folded stand-in ELMo projection
    bh = seq_len * b_elmo           # (1, H)  sum over seq of the bias

    def pad2(a, r, c, dtype):
        return jnp.zeros((r, c), dtype).at[:a.shape[0], :a.shape[1]].set(a.astype(dtype))

    return {
        "w1": pad2(w1, V_pad, H_pad, jnp.bfloat16),
        "bh": pad2(bh, 1, H_pad, jnp.float32),
        "w_lin": pad2(w_lin_t, H_pad, C_pad, jnp.bfloat16),
        "b_lin": pad2(b_lin, 1, C_pad, jnp.float32),
        "num_classes": C,
        "seq_len": seq_len,
    }


def elmo_encoder_forward(x, prep):
    """x: (B, S, 50) int32 char ids. Returns (logits (B, C), probs (B, C))."""
    B, S, NC = x.shape
    assert S == prep["seq_len"], "params were prepared for a different seq_len"

    V_pad, H_pad = prep["w1"].shape
    C_pad = prep["w_lin"].shape[1]
    C = prep["num_classes"]

    SUB = 8
    B_pad = _round_up(B, SUB)

    ntok = S * NC                    # char "tokens" per example
    TT = B * ntok                    # flattened char tokens
    TCHUNK = min(_round_up(TT, 128), 2048)   # lane-dense chunk (1 grid step at toy size)
    n_chunks = pl.cdiv(TT, TCHUNK)
    TT_pad = n_chunks * TCHUNK

    # Flattened char ids, lane-dense rows of TCHUNK; -1 sentinel never matches
    # any vocab id, so padded slots contribute nothing.
    ids = jnp.full((TT_pad,), -1, jnp.int32).at[:TT].set(x.reshape(TT).astype(jnp.int32))
    ids = ids.reshape(n_chunks, 1, TCHUNK)

    kernel = functools.partial(elmo_head_kernel,
                               tokens_per_example=ntok,
                               num_classes=C)

    grid_spec = pltpu.PrefetchScalarGridSpec(
        num_scalar_prefetch=0,
        grid=(n_chunks,),                                   # token reduction axis
        in_specs=[
            pl.BlockSpec((1, 1, TCHUNK), lambda t: (t, 0, 0)),   # ids: new chunk per step
            pl.BlockSpec((V_pad, H_pad), lambda t: (0, 0)),      # weights stay resident
            pl.BlockSpec((1, H_pad), lambda t: (0, 0)),
            pl.BlockSpec((H_pad, C_pad), lambda t: (0, 0)),
            pl.BlockSpec((1, C_pad), lambda t: (0, 0)),
        ],
        out_specs=(
            pl.BlockSpec((B_pad, C_pad), lambda t: (0, 0)),      # written on last step only
            pl.BlockSpec((B_pad, C_pad), lambda t: (0, 0)),
        ),
        scratch_shapes=[pltpu.VMEM((V_pad, B_pad), jnp.float32)],  # counts accumulator
    )

    logits_p, probs_p = pl.pallas_call(
        kernel,
        out_shape=(
            jax.ShapeDtypeStruct((B_pad, C_pad), jnp.float32),
            jax.ShapeDtypeStruct((B_pad, C_pad), jnp.float32),
        ),
        grid_spec=grid_spec,
        compiler_params=pltpu.CompilerParams(
            dimension_semantics=("arbitrary",)),                  # reduction axis
    )(ids, prep["w1"], prep["bh"], prep["w_lin"], prep["b_lin"])

    return logits_p[:B, :C], probs_p[:B, :C]


def elmo_encoder_reference(x, params):
    """Pure-JAX f32 reference with identical stand-in semantics."""
    e_tok = jnp.sum(params["char_emb"][x], axis=2)                    # (B, S, E)
    rep = jnp.einsum("bse,eh->bsh", e_tok, params["w_elmo"]) + params["b_elmo"]
    h = jnp.sum(rep, axis=1)                                          # (B, H)
    o = h @ params["w_lin_t"] + params["b_lin"]                       # (B, C)
    return o, jax.nn.softmax(o, axis=1)


def init_params(key, V=64, E=32, H=32, C=8):
    """Deterministic synthetic parameters (no checkpoint load)."""
    k1, k2, k3, k4 = jax.random.split(key, 4)
    return {
        "char_emb": jax.random.normal(k1, (V, E), jnp.float32) * 0.1,
        "w_elmo":   jax.random.normal(k2, (E, H), jnp.float32) * (1.0 / E**0.5),
        "b_elmo":   jnp.zeros((1, H), jnp.float32),
        # nn.Linear(H, C): weight is (C, H); stored pre-transposed as (H, C).
        "w_lin_t":  jax.random.normal(k3, (H, C), jnp.float32) * (1.0 / H**0.5),
        "b_lin":    (jax.random.normal(k4, (1, C), jnp.float32) * 0.01),
    }


if __name__ == "__main__":
    key = jax.random.PRNGKey(0)
    k_param, k_x = jax.random.split(key)

    B, S, NCHARS, V = 2, 8, 50, 64
    E, H, C = 32, 32, 8
    params = init_params(k_param, V=V, E=E, H=H, C=C)
    x = jax.random.randint(k_x, (B, S, NCHARS), 0, V, dtype=jnp.int32)

    prep = prepare_params(params, seq_len=S)       # one-time fold + pad + cast
    logits, probs = elmo_encoder_forward(x, prep)
    jax.block_until_ready((logits, probs))

    ref_logits, ref_probs = elmo_encoder_reference(x, params)

    assert logits.shape == (B, C) and probs.shape == (B, C)
    # approx reciprocal + bf16 MXU weights -> loose-ish tolerances
    assert bool(jnp.all(jnp.abs(jnp.sum(probs, axis=1) - 1.0) < 1e-2))
    assert bool(jnp.allclose(logits, ref_logits, atol=1e-1, rtol=5e-2))
    assert bool(jnp.allclose(probs, ref_probs, atol=5e-2))

    print("KERNEL_OK")
</pallas_src>

<mosaic_0001>
module attributes {stable_mosaic.version = 11 : i64} {
  func.func @elmo_head_kernel(%arg0: i32, %arg1: memref<1x1x896xi32, #tpu.memory_space<vmem>>, %arg2: memref<128x128xbf16, #tpu.memory_space<vmem>>, %arg3: memref<1x128xf32, #tpu.memory_space<vmem>>, %arg4: memref<128x128xbf16, #tpu.memory_space<vmem>>, %arg5: memref<1x128xf32, #tpu.memory_space<vmem>>, %arg6: memref<8x128xf32, #tpu.memory_space<vmem>>, %arg7: memref<8x128xf32, #tpu.memory_space<vmem>>, %arg8: memref<128x8xf32, #tpu.memory_space<vmem>>) attributes {dimension_semantics = [#tpu.dimension_semantics<arbitrary>], iteration_bounds = array<i64: 1>, scalar_prefetch = 0 : i64, scratch_operands = 1 : i64, tpu.core_type = #tpu.core_type<tc>, window_params = [{transform_indices = @transform_0, window_bounds = array<i64: 1, 1, 896>}, {pipeline_mode = #tpu.pipeline_mode<synchronous>, transform_indices = @transform_1, window_bounds = array<i64: 128, 128>}, {pipeline_mode = #tpu.pipeline_mode<synchronous>, transform_indices = @transform_2, window_bounds = array<i64: 1, 128>}, {pipeline_mode = #tpu.pipeline_mode<synchronous>, transform_indices = @transform_3, window_bounds = array<i64: 128, 128>}, {pipeline_mode = #tpu.pipeline_mode<synchronous>, transform_indices = @transform_4, window_bounds = array<i64: 1, 128>}, {pipeline_mode = #tpu.pipeline_mode<synchronous>, transform_indices = @transform_5, window_bounds = array<i64: 8, 128>}, {pipeline_mode = #tpu.pipeline_mode<synchronous>, transform_indices = @transform_6, window_bounds = array<i64: 8, 128>}]} {
    %c0_i32 = arith.constant 0 : i32
    %0 = arith.cmpi eq, %arg0, %c0_i32 : i32
    %1 = arith.extui %0 : i1 to i32
    %c0_i32_0 = arith.constant 0 : i32
    %2 = arith.cmpi ne, %1, %c0_i32_0 : i32
    scf.if %2 {
      %cst_10 = arith.constant 0.000000e+00 : f32
      %38 = vector.broadcast %cst_10 : f32 to vector<128x8xf32>
      %c0_11 = arith.constant 0 : index
      %c0_12 = arith.constant 0 : index
      %39 = vector.load %arg8[%c0_11, %c0_12] : memref<128x8xf32, #tpu.memory_space<vmem>>, vector<128x8xf32>
      tpu.vector_store %arg8[%c0_11, %c0_12], %38 {strides = array<i32>} : memref<128x8xf32, #tpu.memory_space<vmem>>, vector<128x8xf32>,
    } else {
    }
    %c0 = arith.constant 0 : index
    %c0_1 = arith.constant 0 : index
    %c0_2 = arith.constant 0 : index
    %3 = vector.load %arg1[%c0, %c0_1, %c0_2] : memref<1x1x896xi32, #tpu.memory_space<vmem>>, vector<1x1x896xi32>
    %4 = vector.shape_cast %3 : vector<1x1x896xi32> to vector<1x896xi32>
    %5 = tpu.iota {dimensions = array<i32: 0>} : vector<128x1xi32>
    %6 = vector.broadcast %4 : vector<1x896xi32> to vector<128x896xi32>
    %7 = vector.broadcast %5 : vector<128x1xi32> to vector<128x896xi32>
    %8 = arith.cmpi eq, %6, %7 : vector<128x896xi32>
    %9 = arith.extui %8 : vector<128x896xi1> to vector<128x896xi32>
    %10 = arith.sitofp %9 : vector<128x896xi32> to vector<128x896xf32>
    %11 = arith.truncf %10 : vector<128x896xf32> to vector<128x896xbf16>
    %c896_i32 = arith.constant 896 : i32
    %12 = arith.muli %arg0, %c896_i32 : i32
    %13 = tpu.iota {dimensions = array<i32: 0>} : vector<896x1xi32>
    %14 = vector.broadcast %12 : i32 to vector<896x1xi32>
    %15 = arith.addi %13, %14 : vector<896x1xi32>
    %16 = tpu.iota {dimensions = array<i32: 1>} : vector<1x8xi32>
    %c400_i32 = arith.constant 400 : i32
    %17 = vector.broadcast %c400_i32 : i32 to vector<1x8xi32>
    %18 = arith.muli %16, %17 : vector<1x8xi32>
    %19 = vector.broadcast %15 : vector<896x1xi32> to vector<896x8xi32>
    %20 = vector.broadcast %18 : vector<1x8xi32> to vector<896x8xi32>
    %21 = arith.cmpi sge, %19, %20 : vector<896x8xi32>
    %c400_i32_3 = arith.constant 400 : i32
    %22 = vector.broadcast %c400_i32_3 : i32 to vector<1x8xi32>
    %23 = arith.addi %18, %22 : vector<1x8xi32>
    %24 = vector.broadcast %15 : vector<896x1xi32> to vector<896x8xi32>
    %25 = vector.broadcast %23 : vector<1x8xi32> to vector<896x8xi32>
    %26 = arith.cmpi slt, %24, %25 : vector<896x8xi32>
    %27 = arith.andi %21, %26 : vector<896x8xi1>
    %28 = arith.extui %27 : vector<896x8xi1> to vector<896x8xi32>
    %29 = arith.sitofp %28 : vector<896x8xi32> to vector<896x8xf32>
    %30 = arith.truncf %29 : vector<896x8xf32> to vector<896x8xbf16>
    %c0_4 = arith.constant 0 : index
    %c0_5 = arith.constant 0 : index
    %31 = vector.load %arg8[%c0_4, %c0_5] : memref<128x8xf32, #tpu.memory_space<vmem>>, vector<128x8xf32>
    %cst = arith.constant dense<0.000000e+00> : vector<128x8xf32>
    %32 = tpu.matmul %11, %30, %cst {dimension_numbers = #tpu.dot_dimension_numbers<[1], [0], [0], [1], [0, 0, 1, 1], [], []>} : vector<128x896xbf16>, vector<896x8xbf16>, vector<128x8xf32> -> vector<128x8xf32>
    %33 = arith.addf %31, %32 : vector<128x8xf32>
    %c0_6 = arith.constant 0 : index
    %c0_7 = arith.constant 0 : index
    %34 = vector.load %arg8[%c0_6, %c0_7] : memref<128x8xf32, #tpu.memory_space<vmem>>, vector<128x8xf32>
    tpu.vector_store %arg8[%c0_6, %c0_7], %33 {strides = array<i32>} : memref<128x8xf32, #tpu.memory_space<vmem>>, vector<128x8xf32>,
    %c0_i32_8 = arith.constant 0 : i32
    %35 = arith.cmpi eq, %arg0, %c0_i32_8 : i32
    %36 = arith.extui %35 : i1 to i32
    %c0_i32_9 = arith.constant 0 : i32
    %37 = arith.cmpi ne, %36, %c0_i32_9 : i32
    scf.if %37 {
      %c0_10 = arith.constant 0 : index
      %c0_11 = arith.constant 0 : index
      %38 = vector.load %arg8[%c0_10, %c0_11] : memref<128x8xf32, #tpu.memory_space<vmem>>, vector<128x8xf32>
      %c0_12 = arith.constant 0 : index
      %c0_13 = arith.constant 0 : index
      %39 = vector.load %arg2[%c0_12, %c0_13] : memref<128x128xbf16, #tpu.memory_space<vmem>>, vector<128x128xbf16>
      %40 = arith.extf %39 : vector<128x128xbf16> to vector<128x128xf32>
      %cst_14 = arith.constant dense<0.000000e+00> : vector<8x128xf32>
      %41 = tpu.matmul %38, %40, %cst_14 {dimension_numbers = #tpu.dot_dimension_numbers<[0], [0], [1], [1], [0, 1, 1, 1], [], []>} : vector<128x8xf32>, vector<128x128xf32>, vector<8x128xf32> -> vector<8x128xf32>
      %c0_15 = arith.constant 0 : index
      %c0_16 = arith.constant 0 : index
      %42 = vector.load %arg3[%c0_15, %c0_16] : memref<1x128xf32, #tpu.memory_space<vmem>>, vector<1x128xf32>
      %43 = vector.broadcast %42 : vector<1x128xf32> to vector<8x128xf32>
      %44 = arith.addf %41, %43 : vector<8x128xf32>
      %45 = arith.truncf %44 : vector<8x128xf32> to vector<8x128xbf16>
      %c0_17 = arith.constant 0 : index
      %c0_18 = arith.constant 0 : index
      %46 = vector.load %arg4[%c0_17, %c0_18] : memref<128x128xbf16, #tpu.memory_space<vmem>>, vector<128x128xbf16>
      %cst_19 = arith.constant dense<0.000000e+00> : vector<8x128xf32>
      %47 = tpu.matmul %45, %46, %cst_19 {dimension_numbers = #tpu.dot_dimension_numbers<[1], [0], [0], [1], [0, 0, 1, 1], [], []>} : vector<8x128xbf16>, vector<128x128xbf16>, vector<8x128xf32> -> vector<8x128xf32>
      %c0_20 = arith.constant 0 : index
      %c0_21 = arith.constant 0 : index
      %48 = vector.load %arg5[%c0_20, %c0_21] : memref<1x128xf32, #tpu.memory_space<vmem>>, vector<1x128xf32>
      %49 = vector.broadcast %48 : vector<1x128xf32> to vector<8x128xf32>
      %50 = arith.addf %47, %49 : vector<8x128xf32>
      %c0_22 = arith.constant 0 : index
      %c0_23 = arith.constant 0 : index
      %51 = vector.load %arg6[%c0_22, %c0_23] : memref<8x128xf32, #tpu.memory_space<vmem>>, vector<8x128xf32>
      tpu.vector_store %arg6[%c0_22, %c0_23], %50 {strides = array<i32>} : memref<8x128xf32, #tpu.memory_space<vmem>>, vector<8x128xf32>,
      %52 = tpu.iota {dimensions = array<i32: 1>} : vector<8x128xi32>
      %c8_i32 = arith.constant 8 : i32
      %53 = vector.broadcast %c8_i32 : i32 to vector<8x128xi32>
      %54 = arith.cmpi slt, %52, %53 : vector<8x128xi32>
      %cst_24 = arith.constant -1.000000e+30 : f32
      %55 = vector.broadcast %cst_24 : f32 to vector<8x128xf32>
      %56 = arith.select %54, %50, %55 : vector<8x128xi1>, vector<8x128xf32>
      %cst_25 = arith.constant dense<0xFF800000> : vector<8xf32>
      %57 = vector.multi_reduction <maximumf>, %56, %cst_25 [1] : vector<8x128xf32> to vector<8xf32>
      %58 = vector.shape_cast %57 : vector<8xf32> to vector<8x1xf32>
      %59 = vector.broadcast %58 : vector<8x1xf32> to vector<8x128xf32>
      %60 = arith.subf %56, %59 : vector<8x128xf32>
      %61 = math.exp %60 : vector<8x128xf32>
      %cst_26 = arith.constant dense<0.000000e+00> : vector<8xf32>
      %62 = vector.multi_reduction <add>, %61, %cst_26 [1] : vector<8x128xf32> to vector<8xf32>
      %63 = vector.shape_cast %62 : vector<8xf32> to vector<8x1xf32>
      %64 = tpu.reciprocal %63 {approx = true} : vector<8x1xf32> -> vector<8x1xf32>
      %65 = vector.broadcast %64 : vector<8x1xf32> to vector<8x128xf32>
      %66 = arith.mulf %61, %65 : vector<8x128xf32>
      %c0_27 = arith.constant 0 : index
      %c0_28 = arith.constant 0 : index
      %67 = vector.load %arg7[%c0_27, %c0_28] : memref<8x128xf32, #tpu.memory_space<vmem>>, vector<8x128xf32>
      tpu.vector_store %arg7[%c0_27, %c0_28], %66 {strides = array<i32>} : memref<8x128xf32, #tpu.memory_space<vmem>>, vector<8x128xf32>,
    } else {
    }
    return
  }
  func.func @transform_0(%arg0: i32) -> (i32, i32, i32) {
    %c0_i32 = arith.constant 0 : i32
    %c0_i32_0 = arith.constant 0 : i32
    %c0_i32_1 = arith.constant 0 : i32
    return %arg0, %c0_i32, %c0_i32_0 : i32, i32, i32
  }
  func.func @transform_1(%arg0: i32) -> (i32, i32) {
    %c0_i32 = arith.constant 0 : i32
    %c0_i32_0 = arith.constant 0 : i32
    %c0_i32_1 = arith.constant 0 : i32
    return %c0_i32, %c0_i32_0 : i32, i32
  }
  func.func @transform_2(%arg0: i32) -> (i32, i32) {
    %c0_i32 = arith.constant 0 : i32
    %c0_i32_0 = arith.constant 0 : i32
    %c0_i32_1 = arith.constant 0 : i32
    return %c0_i32, %c0_i32_0 : i32, i32
  }
  func.func @transform_3(%arg0: i32) -> (i32, i32) {
    %c0_i32 = arith.constant 0 : i32
    %c0_i32_0 = arith.constant 0 : i32
    %c0_i32_1 = arith.constant 0 : i32
    return %c0_i32, %c0_i32_0 : i32, i32
  }
  func.func @transform_4(%arg0: i32) -> (i32, i32) {
    %c0_i32 = arith.constant 0 : i32
    %c0_i32_0 = arith.constant 0 : i32
    %c0_i32_1 = arith.constant 0 : i32
    return %c0_i32, %c0_i32_0 : i32, i32
  }
  func.func @transform_5(%arg0: i32) -> (i32, i32) {
    %c0_i32 = arith.constant 0 : i32
    %c0_i32_0 = arith.constant 0 : i32
    %c0_i32_1 = arith.constant 0 : i32
    return %c0_i32, %c0_i32_0 : i32, i32
  }
  func.func @transform_6(%arg0: i32) -> (i32, i32) {
    %c0_i32 = arith.constant 0 : i32
    %c0_i32_0 = arith.constant 0 : i32
    %c0_i32_1 = arith.constant 0 : i32
    return %c0_i32, %c0_i32_0 : i32, i32
  }
}

</mosaic_0001>

<bundles_post_ra>
// kernel: tpu_custom_call.1
= control target key start
LH: loop header
LB: loop body
LE: loop exit
PB: predicated region body
PF: predicated region fallthrough
CT: control target
= control target key end

     0   :  { %12 = vsyncpa [#allocation4], 0  ;;  %s4313_s0 = inlined_call_operand.hbm [shape: s32[1,1,896], index: 0, kind: input, shape index: {}]   ;;  %s4314_s1 = inlined_call_operand.hbm [shape: bf16[128,128], index: 1, kind: input, shape index: {}]   ;;  %s4315_s2 = inlined_call_operand.vmem [shape: f32[1,128], index: 2, kind: input, shape index: {}]   ;;  %s4316_s3 = inlined_call_operand.hbm [shape: bf16[128,128], index: 3, kind: input, shape index: {}]   ;;  %s4317_s4 = inlined_call_operand.vmem [shape: f32[1,128], index: 4, kind: input, shape index: {}]   ;;  %s4318_s5 = inlined_call_operand.hbm [shape: f32[8,128], index: 5, kind: output, shape index: {0}]   ;;  %s4319_s6 = inlined_call_operand.hbm [shape: f32[8,128], index: 6, kind: output, shape index: {1}]  }
   0x1   :  { %13 = vsyncpa [#allocation7], 0 }
   0x2   :  { %14 = vsyncpa [#allocation5], 0 }
   0x3   :  { %15 = vsyncpa [#allocation11], 0  ;;  %s3070_s21 = smov [#allocation6]  }
   0x4   :  { %s31_s22 = sshll.u32 %s3070_s21, 4  ;;  %s32_s22 = int_to_ptr.vmem [resolvable:$true] %s31_s22 }
   0x5   :  { %s2970_s23 = scalar_lea.vmem %s32_s22, 1024  ;;  %p2975_p1 = scmp.lt.s32.totalorder %s32_s22, %s32_s22 }
   0x6   :  { %p2971_p0 = scmp.ne.s32.totalorder %s32_s22, %s2970_s23  ;;  %p2976_p2 = scmp.lt.s32.totalorder %s2970_s23, %s2970_s23 }
   0x8   :  { %p2977_p3 = por %p2976_p2, %p2975_p1 }
   0xa   :  { %p2978_p4 = pnand %p2977_p3, %p2971_p0 }
   0xc   :  { %2981 = shalt.err (!%p2978_p4)
}
   0xd   :  { %s3071_s24 = smov 64   ;;  %s3072_s25 = smov 4  }
   0xe   :  { %37 = dma.hbm_to_vmem [thread:$0]  %s4314_s1, 1024, %s32_s22, [#allocation7], %s3071_s24, %s3071_s24, %s3072_s25  }
   0xf   :  { %s3073_s28 = smov [#allocation3]   ;;  %s3074_s30 = smov [#allocation8]  }
  0x10   :  { %s22_s29 = sshll.u32 %s3073_s28, 4  ;;  %s45_s7 = sshll.u32 %s3074_s30, 4  ;;  %s23_s29 = int_to_ptr.vmem [resolvable:$true] %s22_s29  ;;  %s46_s7 = int_to_ptr.vmem [resolvable:$true] %s45_s7 }
  0x11   :  { %s2990_s8 = scalar_lea.vmem %s23_s29, 112  ;;  %s2994_s9 = scalar_lea.vmem %s23_s29, 128 }
  0x12   :  { %p2991_p5 = scmp.ne.s32.totalorder %s23_s29, %s2990_s8  ;;  %p2995_p6 = scmp.lt.s32.totalorder %s23_s29, %s23_s29 }
  0x13   :  { %p2996_p7 = scmp.lt.s32.totalorder %s2994_s9, %s2990_s8 }
  0x15   :  { %p2997_p8 = por %p2996_p7, %p2995_p6 }
  0x17   :  { %p2998_p9 = pnand %p2997_p8, %p2991_p5 }
  0x19   :  { %3001 = shalt.err (!%p2998_p9)
}
  0x1a   :  { %25 = dma.hbm_to_vmem [thread:$0]  %s4313_s0, 112, %s23_s29, [#allocation4]  }
  0x1b   :  { %s3010_s12 = scalar_lea.vmem %s46_s7, 1024  ;;  %p3015_p11 = scmp.lt.s32.totalorder %s46_s7, %s46_s7 }
  0x1c   :  { %p3011_p10 = scmp.ne.s32.totalorder %s46_s7, %s3010_s12  ;;  %p3016_p12 = scmp.lt.s32.totalorder %s3010_s12, %s3010_s12 }
  0x1e   :  { %p3017_p13 = por %p3016_p12, %p3015_p11 }
  0x20   :  { %p3018_p0 = pnand %p3017_p13, %p3011_p10 }
  0x22   :  { %3021 = shalt.err (!%p3018_p0)
}
  0x23   :  { %51 = dma.hbm_to_vmem [thread:$0]  %s4316_s3, 1024, %s46_s7, [#allocation7], %s3071_s24, %s3071_s24, %s3072_s25  }
  0x24   :  { %3062 = dma.done.wait [#allocation4], 112  }
  0x25   :  { %3063 = vsyncadd [#allocation4], 4294967184  ;;  %v86_v0 = vlaneseq }
  0x26   :  { %3064 = dma.done.wait [#allocation7], 2048  }
  0x27   :  { %3065 = vsyncadd [#allocation7], 4294965248  ;;  %v3124_v1 = vshrl.u32 %v86_v0, 7  ;;  %v3126_v2 = vand.u32 127, %v86_v0  ;;  %v3075_v12 = vmov 1.0|1.0  }
  0x28   :  { %v3301_v37 = vld [vmem:[#allocation3] sm:$0xff] }
  0x29   :  { %4323 = vst [vmem:[#allocation16_spill] sm:$0xff] %v3126_v2  ;;  %v538_v3 = vadd.s32 240, %v3124_v1  ;;  %v539_v4 = vadd.s32 248, %v3124_v1  ;;  %v3131_v5 = vmul.u32 400, %v3126_v2  ;;  %v3134_v6 = vadd.s32 112, %v3124_v1 }
  0x2a   :  { %v3141_v8 = vadd.s32 120, %v3124_v1  ;;  %v536_v9 = vadd.s32 224, %v3124_v1  ;;  %v537_v10 = vadd.s32 232, %v3124_v1  ;;  %v3157_v11 = vadd.s32 96, %v3124_v1 }
  0x2b   :  { %vm766_vm0 = vcmp.ge.s32.totalorder %v538_v3, %v3131_v5  ;;  %v3138_v7 = vadd.s32 400, %v3131_v5  ;;  %vm767_vm1 = vcmp.ge.s32.totalorder %v539_v4, %v3131_v5  ;;  %vm750_vm5 = vcmp.ge.s32.totalorder %v3134_v6, %v3131_v5 }
  0x2c   :  { %vm751_vm8 = vcmp.ge.s32.totalorder %v3141_v8, %v3131_v5  ;;  %vm764_vm12 = vcmp.ge.s32.totalorder %v536_v9, %v3131_v5  ;;  %v3164_v13 = vadd.s32 104, %v3124_v1  ;;  %vm765_vm15 = vcmp.ge.s32.totalorder %v537_v10, %v3131_v5 }
  0x2d   :  { %vm879_vm2 = vcmp.lt.s32.totalorder %v538_v3, %v3138_v7  ;;  %vm880_vm3 = vcmp.lt.s32.totalorder %v539_v4, %v3138_v7  ;;  %vm863_vm6 = vcmp.lt.s32.totalorder %v3134_v6, %v3138_v7  ;;  %vm864_vm9 = vcmp.lt.s32.totalorder %v3141_v8, %v3138_v7 }
  0x2e   :  { %vm991_vm4 = vmand %vm766_vm0, %vm879_vm2  ;;  %vm877_vm13 = vcmp.lt.s32.totalorder %v536_v9, %v3138_v7  ;;  %vm878_vm0 = vcmp.lt.s32.totalorder %v537_v10, %v3138_v7  ;;  %v534_v14 = vadd.s32 208, %v3124_v1  ;;  %v535_v15 = vadd.s32 216, %v3124_v1 }
  0x2f   :  { %vm992_vm7 = vmand %vm767_vm1, %vm880_vm3  ;;  %vm748_vm3 = vcmp.ge.s32.totalorder %v3157_v11, %v3131_v5  ;;  %v3181_v16 = vadd.s32 80, %v3124_v1  ;;  %v3188_v17 = vadd.s32 88, %v3124_v1  ;;  %v532_v18 = vadd.s32 192, %v3124_v1 }
  0x30   :  { %vm2345_vm10 = vmpackc.low %vm992_vm7, %vm991_vm4  ;;  %vm861_vm4 = vcmp.lt.s32.totalorder %v3157_v11, %v3138_v7  ;;  %vm862_vm7 = vcmp.lt.s32.totalorder %v3164_v13, %v3138_v7  ;;  %v533_v19 = vadd.s32 200, %v3124_v1  ;;  %v3205_v20 = vadd.s32 64, %v3124_v1 }
  0x31   :  { %2923 = vmatprep.subr.msk.bf16.mxu1 %vm2345_vm10, %v3075_v12  ;;  %vm975_vm11 = vmand %vm750_vm5, %vm863_vm6  ;;  %2602 = vmatprep.subr.msk.bf16.mxu0 %vm2345_vm10, %v3075_v12  ;;  %vm749_vm6 = vcmp.ge.s32.totalorder %v3164_v13, %v3131_v5  ;;  %vm762_vm10 = vcmp.ge.s32.totalorder %v534_v14, %v3131_v5  ;;  %v3212_v21 = vadd.s32 72, %v3124_v1  ;;  %v530_v22 = vadd.s32 176, %v3124_v1 }
  0x32   :  { %vm976_vm14 = vmand %vm751_vm8, %vm864_vm9  ;;  %v531_v23 = vadd.s32 184, %v3124_v1  ;;  %v3229_v24 = vadd.s32 48, %v3124_v1  ;;  %v3236_v25 = vadd.s32 56, %v3124_v1  ;;  %v528_v26 = vadd.s32 160, %v3124_v1 }
  0x33   :  { %vm2329_vm1 = vmpackc.low %vm976_vm14, %vm975_vm11  ;;  %vm875_vm11 = vcmp.lt.s32.totalorder %v534_v14, %v3138_v7  ;;  %vm876_vm14 = vcmp.lt.s32.totalorder %v535_v15, %v3138_v7  ;;  %v529_v27 = vadd.s32 168, %v3124_v1  ;;  %v3253_v28 = vadd.s32 32, %v3124_v1 }
  0x34   :  { %2931 = vmatpush3.bf16.msk.msra.mxu1 %vm2329_vm1, %v3075_v12  ;;  %2603 = vmatpush3.bf16.msk.msra.mxu0 %vm2329_vm1, %v3075_v12  ;;  %vm989_vm2 = vmand %vm764_vm12, %vm877_vm13  ;;  %vm763_vm13 = vcmp.ge.s32.totalorder %v535_v15, %v3131_v5  ;;  %vm746_vm1 = vcmp.ge.s32.totalorder %v3181_v16, %v3131_v5  ;;  %v3260_v29 = vadd.s32 40, %v3124_v1  ;;  %v526_v30 = vadd.s32 144, %v3124_v1 }
  0x35   :  { %vm990_vm5 = vmand %vm765_vm15, %vm878_vm0  ;;  %v527_v31 = vadd.s32 152, %v3124_v1  ;;  %v3277_v32 = vadd.s32 16, %v3124_v1  ;;  %v3284_v33 = vadd.s32 24, %v3124_v1  ;;  %v524_v34 = vadd.s32 128, %v3124_v1 }
  0x36   :  { %vm2347_vm8 = vmpackc.low %vm990_vm5, %vm989_vm2  ;;  %vm859_vm2 = vcmp.lt.s32.totalorder %v3181_v16, %v3138_v7  ;;  %vm860_vm5 = vcmp.lt.s32.totalorder %v3188_v17, %v3138_v7  ;;  %v525_v35 = vadd.s32 136, %v3124_v1  ;;  %v109_v36 = vsub.s32 1, %v3124_v1 }
  0x37   :  { %2924 = vmatprep.subr.msk.bf16.mxu1 %vm2347_vm8, %v3075_v12  ;;  %vm973_vm9 = vmand %vm748_vm3, %vm861_vm4  ;;  %2604 = vmatprep.subr.msk.bf16.mxu0 %vm2347_vm8, %v3075_v12  ;;  %vm747_vm4 = vcmp.ge.s32.totalorder %v3188_v17, %v3131_v5  ;;  %vm760_vm8 = vcmp.ge.s32.totalorder %v532_v18, %v3131_v5  ;;  %v105_v38 = vsub.s32 0, %v3124_v1  ;;  %v3309_v39 = vadd.s32 8, %v3124_v1 }
  0x38   :  { %vm974_vm12 = vmand %vm749_vm6, %vm862_vm7  ;;  %v3314_v40 = vrot.slane %v3301_v37, %v109_v36  ;;  %v570_v42 = vadd.s32 496, %v3124_v1  ;;  %v571_v43 = vadd.s32 504, %v3124_v1  ;;  %v554_v44 = vadd.s32 368, %v3124_v1 }
  0x39   :  { %vm2331_vm15 = vmpackc.low %vm974_vm12, %vm973_vm9  ;;  %vm873_vm9 = vcmp.lt.s32.totalorder %v532_v18, %v3138_v7  ;;  %vm874_vm12 = vcmp.lt.s32.totalorder %v533_v19, %v3138_v7  ;;  %v3323_v41 = vrot.slane %v3301_v37, %v105_v38  ;;  %v555_v45 = vadd.s32 376, %v3124_v1 }
  0x3a   :  { %2932 = vmatpush3.bf16.msk.msra.mxu1 %vm2331_vm15, %v3075_v12  ;;  %2605 = vmatpush3.bf16.msk.msra.mxu0 %vm2331_vm15, %v3075_v12  ;;  %vm987_vm0 = vmand %vm762_vm10, %vm875_vm11  ;;  %vm761_vm11 = vcmp.ge.s32.totalorder %v533_v19, %v3131_v5  ;;  %vm744_vm15 = vcmp.ge.s32.totalorder %v3205_v20, %v3131_v5  ;;  %v602_v46 = vadd.s32 752, %v3124_v1  ;;  %v603_v47 = vadd.s32 760, %v3124_v1 }
  0x3b   :  { %vm988_vm3 = vmand %vm763_vm13, %vm876_vm14  ;;  %v586_v48 = vadd.s32 624, %v3124_v1  ;;  %v587_v49 = vadd.s32 632, %v3124_v1  ;;  %v568_v50 = vadd.s32 480, %v3124_v1  ;;  %v569_v51 = vadd.s32 488, %v3124_v1 }
  0x3c   :  { %vm2349_vm6 = vmpackc.low %vm988_vm3, %vm987_vm0  ;;  %vm857_vm0 = vcmp.lt.s32.totalorder %v3205_v20, %v3138_v7  ;;  %vm858_vm3 = vcmp.lt.s32.totalorder %v3212_v21, %v3138_v7  ;;  %v552_v52 = vadd.s32 352, %v3124_v1  ;;  %v553_v53 = vadd.s32 360, %v3124_v1 }
  0x3d   :  { %2925 = vmatprep.subr.msk.bf16.mxu1 %vm2349_vm6, %v3075_v12  ;;  %vm971_vm7 = vmand %vm746_vm1, %vm859_vm2  ;;  %2606 = vmatprep.subr.msk.bf16.mxu0 %vm2349_vm6, %v3075_v12  ;;  %vm745_vm2 = vcmp.ge.s32.totalorder %v3212_v21, %v3131_v5  ;;  %vm758_vm6 = vcmp.ge.s32.totalorder %v530_v22, %v3131_v5  ;;  %v600_v54 = vadd.s32 736, %v3124_v1  ;;  %v601_v55 = vadd.s32 744, %v3124_v1 }
  0x3e   :  { %vm972_vm10 = vmand %vm747_vm4, %vm860_vm5  ;;  %v584_v56 = vadd.s32 608, %v3124_v1  ;;  %v585_v57 = vadd.s32 616, %v3124_v1  ;;  %v566_v58 = vadd.s32 464, %v3124_v1  ;;  %v567_v59 = vadd.s32 472, %v3124_v1 }
  0x3f   :  { %vm2333_vm13 = vmpackc.low %vm972_vm10, %vm971_vm7  ;;  %vm871_vm7 = vcmp.lt.s32.totalorder %v530_v22, %v3138_v7  ;;  %vm872_vm10 = vcmp.lt.s32.totalorder %v531_v23, %v3138_v7  ;;  %v550_v60 = vadd.s32 336, %v3124_v1  ;;  %v551_v61 = vadd.s32 344, %v3124_v1 }
  0x40   :  { %2933 = vmatpush3.bf16.msk.msra.mxu1 %vm2333_vm13, %v3075_v12  ;;  %2607 = vmatpush3.bf16.msk.msra.mxu0 %vm2333_vm13, %v3075_v12  ;;  %vm985_vm14 = vmand %vm760_vm8, %vm873_vm9  ;;  %vm759_vm9 = vcmp.ge.s32.totalorder %v531_v23, %v3131_v5  ;;  %vm742_vm13 = vcmp.ge.s32.totalorder %v3229_v24, %v3131_v5  ;;  %v598_v62 = vadd.s32 720, %v3124_v1  ;;  %v599_v63 = vadd.s32 728, %v3124_v1 }
  0x41   :  { %vm986_vm1 = vmand %vm761_vm11, %vm874_vm12  ;;  %v582_v0 = vadd.s32 592, %v3124_v1  ;;  %v583_v3 = vadd.s32 600, %v3124_v1  ;;  %v564_v4 = vadd.s32 448, %v3124_v1  ;;  %v565_v9 = vadd.s32 456, %v3124_v1 }
  0x42   :  { %vm2351_vm4 = vmpackc.low %vm986_vm1, %vm985_vm14  ;;  %vm855_vm14 = vcmp.lt.s32.totalorder %v3229_v24, %v3138_v7  ;;  %vm856_vm1 = vcmp.lt.s32.totalorder %v3236_v25, %v3138_v7  ;;  %v548_v10 = vadd.s32 320, %v3124_v1  ;;  %v549_v14 = vadd.s32 328, %v3124_v1 }
  0x43   :  { %2926 = vmatprep.subr.msk.bf16.mxu1 %vm2351_vm4, %v3075_v12  ;;  %vm969_vm5 = vmand %vm744_vm15, %vm857_vm0  ;;  %2608 = vmatprep.subr.msk.bf16.mxu0 %vm2351_vm4, %v3075_v12  ;;  %vm743_vm0 = vcmp.ge.s32.totalorder %v3236_v25, %v3131_v5  ;;  %vm756_vm4 = vcmp.ge.s32.totalorder %v528_v26, %v3131_v5  ;;  %v596_v15 = vadd.s32 704, %v3124_v1  ;;  %v597_v18 = vadd.s32 712, %v3124_v1 }
  0x44   :  { %vm970_vm8 = vmand %vm745_vm2, %vm858_vm3  ;;  %v580_v19 = vadd.s32 576, %v3124_v1  ;;  %v581_v22 = vadd.s32 584, %v3124_v1  ;;  %v562_v23 = vadd.s32 432, %v3124_v1  ;;  %v579_v36 = vadd.s32 568, %v3124_v1 }
  0x45   :  { %vm2335_vm11 = vmpackc.low %vm970_vm8, %vm969_vm5  ;;  %vm869_vm5 = vcmp.lt.s32.totalorder %v528_v26, %v3138_v7  ;;  %vm870_vm8 = vcmp.lt.s32.totalorder %v529_v27, %v3138_v7  ;;  %v563_v26 = vadd.s32 440, %v3124_v1  ;;  %v560_v38 = vadd.s32 416, %v3124_v1 }
  0x46   :  { %2934 = vmatpush3.bf16.msk.msra.mxu1 %vm2335_vm11, %v3075_v12  ;;  %2609 = vmatpush3.bf16.msk.msra.mxu0 %vm2335_vm11, %v3075_v12  ;;  %vm983_vm12 = vmand %vm758_vm6, %vm871_vm7  ;;  %vm757_vm7 = vcmp.ge.s32.totalorder %v529_v27, %v3131_v5  ;;  %vm740_vm11 = vcmp.ge.s32.totalorder %v3253_v28, %v3131_v5  ;;  %v546_v27 = vadd.s32 304, %v3124_v1 }
  0x47   :  { %vm984_vm15 = vmand %vm759_vm9, %vm872_vm10 }
  0x48   :  { %vm2353_vm2 = vmpackc.low %vm984_vm15, %vm983_vm12  ;;  %vm853_vm12 = vcmp.lt.s32.totalorder %v3253_v28, %v3138_v7  ;;  %vm854_vm15 = vcmp.lt.s32.totalorder %v3260_v29, %v3138_v7 }
  0x49   :  { %2927 = vmatprep.subr.msk.bf16.mxu1 %vm2353_vm2, %v3075_v12  ;;  %vm967_vm3 = vmand %vm742_vm13, %vm855_vm14  ;;  %2610 = vmatprep.subr.msk.bf16.mxu0 %vm2353_vm2, %v3075_v12  ;;  %vm741_vm14 = vcmp.ge.s32.totalorder %v3260_v29, %v3131_v5  ;;  %vm754_vm2 = vcmp.ge.s32.totalorder %v526_v30, %v3131_v5 }
  0x4a   :  { %vm968_vm6 = vmand %vm743_vm0, %vm856_vm1 }
  0x4b   :  { %vm2337_vm9 = vmpackc.low %vm968_vm6, %vm967_vm3  ;;  %vm867_vm3 = vcmp.lt.s32.totalorder %v526_v30, %v3138_v7  ;;  %vm868_vm6 = vcmp.lt.s32.totalorder %v527_v31, %v3138_v7  ;;  %v547_v30 = vadd.s32 312, %v3124_v1 }
  0x4c   :  { %2935 = vmatpush3.bf16.msk.msra.mxu1 %vm2337_vm9, %v3075_v12  ;;  %2611 = vmatpush3.bf16.msk.msra.mxu0 %vm2337_vm9, %v3075_v12  ;;  %vm981_vm10 = vmand %vm756_vm4, %vm869_vm5  ;;  %vm755_vm5 = vcmp.ge.s32.totalorder %v527_v31, %v3131_v5  ;;  %vm738_vm9 = vcmp.ge.s32.totalorder %v3277_v32, %v3131_v5  ;;  %v594_v31 = vadd.s32 688, %v3124_v1 }
  0x4d   :  { %vm982_vm13 = vmand %vm757_vm7, %vm870_vm8 }
  0x4e   :  { %vm2355_vm0 = vmpackc.low %vm982_vm13, %vm981_vm10  ;;  %vm851_vm10 = vcmp.lt.s32.totalorder %v3277_v32, %v3138_v7  ;;  %vm852_vm13 = vcmp.lt.s32.totalorder %v3284_v33, %v3138_v7 }
  0x4f   :  { %2928 = vmatprep.subr.msk.bf16.mxu1 %vm2355_vm0, %v3075_v12  ;;  %vm965_vm1 = vmand %vm740_vm11, %vm853_vm12  ;;  %2612 = vmatprep.subr.msk.bf16.mxu0 %vm2355_vm0, %v3075_v12  ;;  %vm739_vm12 = vcmp.ge.s32.totalorder %v3284_v33, %v3131_v5  ;;  %vm752_vm0 = vcmp.ge.s32.totalorder %v524_v34, %v3131_v5 }
  0x50   :  { %vm966_vm4 = vmand %vm741_vm14, %vm854_vm15 }
  0x51   :  { %vm2339_vm7 = vmpackc.low %vm966_vm4, %vm965_vm1  ;;  %vm865_vm1 = vcmp.lt.s32.totalorder %v524_v34, %v3138_v7  ;;  %vm866_vm4 = vcmp.lt.s32.totalorder %v525_v35, %v3138_v7  ;;  %v595_v34 = vadd.s32 696, %v3124_v1 }
  0x52   :  { %2936 = vmatpush3.bf16.msk.msra.mxu1 %vm2339_vm7, %v3075_v12  ;;  %2613 = vmatpush3.bf16.msk.msra.mxu0 %vm2339_vm7, %v3075_v12  ;;  %vm979_vm8 = vmand %vm754_vm2, %vm867_vm3  ;;  %vm753_vm3 = vcmp.ge.s32.totalorder %v525_v35, %v3131_v5  ;;  %vm736_vm7 = vcmp.ge.s32.totalorder %v3124_v1, %v3131_v5  ;;  %v578_v35 = vadd.s32 560, %v3124_v1 }
  0x53   :  { %vm980_vm11 = vmand %vm755_vm5, %vm868_vm6 }
  0x54   :  { %vm2357_vm14 = vmpackc.low %vm980_vm11, %vm979_vm8  ;;  %vm849_vm8 = vcmp.lt.s32.totalorder %v3124_v1, %v3138_v7  ;;  %vm850_vm11 = vcmp.lt.s32.totalorder %v3309_v39, %v3138_v7 }
  0x55   :  { %2929 = vmatprep.subr.msk.bf16.mxu1 %vm2357_vm14, %v3075_v12  ;;  %vm963_vm15 = vmand %vm738_vm9, %vm851_vm10  ;;  %2614 = vmatprep.subr.msk.bf16.mxu0 %vm2357_vm14, %v3075_v12  ;;  %vm737_vm10 = vcmp.ge.s32.totalorder %v3309_v39, %v3131_v5  ;;  %vm188_vm14 = vcmp.eq.s32.totalorder %v3314_v40, %v3205_v20 }
  0x56   :  { %vm964_vm2 = vmand %vm739_vm12, %vm852_vm13 }
  0x57   :  { %vm2341_vm5 = vmpackc.low %vm964_vm2, %vm963_vm15  ;;  %vm195_vm15 = vcmp.eq.s32.totalorder %v3314_v40, %v3212_v21  ;;  %vm194_vm2 = vcmp.eq.s32.totalorder %v3323_v41, %v3212_v21 }
  0x58   :  { %2937 = vmatpush3.bf16.msk.msra.mxu1 %vm2341_vm5, %v3075_v12  ;;  %2615 = vmatpush3.bf16.msk.msra.mxu0 %vm2341_vm5, %v3075_v12  ;;  %vm977_vm6 = vmand %vm752_vm0, %vm865_vm1  ;;  %vm187_vm1 = vcmp.eq.s32.totalorder %v3323_v41, %v3205_v20  ;;  %vm911_vm5 = vcmp.lt.s32.totalorder %v570_v42, %v3138_v7 }
  0x59   :  { %vm978_vm9 = vmand %vm753_vm3, %vm866_vm4  ;;  %vm798_vm4 = vcmp.ge.s32.totalorder %v570_v42, %v3131_v5  ;;  %v561_v42 = vadd.s32 424, %v3124_v1 }
  0x5a   :  { %vm2359_vm12 = vmpackc.low %vm978_vm9, %vm977_vm6 }
  0x5b   :  { %2930 = vmatprep.subr.msk.bf16.mxu1 %vm2359_vm12, %v3075_v12  ;;  %vm961_vm13 = vmand %vm736_vm7, %vm849_vm8  ;;  %2616 = vmatprep.subr.msk.bf16.mxu0 %vm2359_vm12, %v3075_v12  ;;  %vm799_vm7 = vcmp.ge.s32.totalorder %v571_v43, %v3131_v5  ;;  %vm912_vm8 = vcmp.lt.s32.totalorder %v571_v43, %v3138_v7  ;;  %vm139_vm12 = vcmp.eq.s32.totalorder %v3314_v40, %v3309_v39  ;;  %v544_v43 = vadd.s32 288, %v3124_v1 }
  0x5c   :  { %vm962_vm0 = vmand %vm737_vm10, %vm850_vm11  ;;  %vm132_vm11 = vcmp.eq.s32.totalorder %v3314_v40, %v3124_v1 }
  0x5d   :  { %vm2343_vm3 = vmpackc.low %vm962_vm0, %vm961_vm13 }
  0x5e   :  { %2938 = vmatpush3.bf16.msk.msra.mxu1 %vm2343_vm3, %v3075_v12  ;;  %2617 = vmatpush3.bf16.msk.msra.mxu0 %vm2343_vm3, %v3075_v12  ;;  %vm2377_vm6 = vmpackc.low %vm195_vm15, %vm188_vm14  ;;  %vm782_vm14 = vcmp.ge.s32.totalorder %v554_v44, %v3131_v5  ;;  %vm895_vm15 = vcmp.lt.s32.totalorder %v554_v44, %v3138_v7  ;;  %vm783_vm3 = vcmp.ge.s32.totalorder %v555_v45, %v3131_v5  ;;  %v545_v44 = vadd.s32 296, %v3124_v1 }
  0x5f   :  { %2378 = vmatprep.mubr.msk.bf16.mxu1 %vm2377_vm6, %v3075_v12  ;;  %vm2379_vm9 = vmpackc.low %vm194_vm2, %vm187_vm1  ;;  %vm896_vm1 = vcmp.lt.s32.totalorder %v555_v45, %v3138_v7  ;;  %vm138_vm6 = vcmp.eq.s32.totalorder %v3323_v41, %v3309_v39  ;;  %v592_v45 = vadd.s32 672, %v3124_v1 }
  0x60   :  { %vm1023_vm10 = vmand %vm798_vm4, %vm911_vm5  ;;  %vm131_vm5 = vcmp.eq.s32.totalorder %v3323_v41, %v3124_v1 }
  0x61   :  { %2380 = vmatmul.mubr.msk.bf16.vlgmr.msra.gmra.mxu1 %vm2379_vm9, %v3075_v12  ;;  %vm1024_vm13 = vmand %vm799_vm7, %vm912_vm8  ;;  %vm830_vm8 = vcmp.ge.s32.totalorder %v602_v46, %v3131_v5  ;;  %vm943_vm9 = vcmp.lt.s32.totalorder %v602_v46, %v3138_v7  ;;  %v593_v46 = vadd.s32 680, %v3124_v1 }
  0x62   :  { %vm2409_vm0 = vmpackc.low %vm1024_vm13, %vm1023_vm10 }
  0x63   :  { %2666 = vmatprep.subr.msk.bf16.mxu1 %vm2409_vm0, %v3075_v12  ;;  %vm2361_vm2 = vmpackc.low %vm139_vm12, %vm132_vm11  ;;  %vm831_vm11 = vcmp.ge.s32.totalorder %v603_v47, %v3131_v5  ;;  %vm944_vm12 = vcmp.lt.s32.totalorder %v603_v47, %v3138_v7  ;;  %vm927_vm0 = vcmp.lt.s32.totalorder %v586_v48, %v3138_v7  ;;  %v576_v47 = vadd.s32 544, %v3124_v1 }
  0x64   :  { %2362 = vmatprep.mubr.msk.bf16.mxu0 %vm2361_vm2, %v3075_v12  ;;  %vm1007_vm4 = vmand %vm782_vm14, %vm895_vm15  ;;  %vm814_vm15 = vcmp.ge.s32.totalorder %v586_v48, %v3131_v5  ;;  %vm928_vm2 = vcmp.lt.s32.totalorder %v587_v49, %v3138_v7  ;;  %v577_v48 = vadd.s32 552, %v3124_v1 }
  0x65   :  { %vm1008_vm7 = vmand %vm783_vm3, %vm896_vm1  ;;  %vm815_vm1 = vcmp.ge.s32.totalorder %v587_v49, %v3131_v5  ;;  %v558_v49 = vadd.s32 400, %v3124_v1 }
  0x66   :  { %vm2393_vm10 = vmpackc.low %vm1008_vm7, %vm1007_vm4  ;;  %vm909_vm7 = vcmp.lt.s32.totalorder %v568_v50, %v3138_v7 }
  0x67   :  { %2667 = vmatpush3.bf16.msk.msra.mxu1 %vm2393_vm10, %v3075_v12  ;;  %vm2363_vm13 = vmpackc.low %vm138_vm6, %vm131_vm5  ;;  %vm796_vm6 = vcmp.ge.s32.totalorder %v568_v50, %v3131_v5  ;;  %vm910_vm10 = vcmp.lt.s32.totalorder %v569_v51, %v3138_v7  ;;  %v559_v50 = vadd.s32 408, %v3124_v1 }
  0x68   :  { %2364 = vmatmul.mubr.msk.bf16.vlgmr.msra.gmra.mxu0 %vm2363_vm13, %v3075_v12  ;;  %vm1055_vm14 = vmand %vm830_vm8, %vm943_vm9  ;;  %vm797_vm9 = vcmp.ge.s32.totalorder %v569_v51, %v3131_v5  ;;  %vm780_vm13 = vcmp.ge.s32.totalorder %v552_v52, %v3131_v5  ;;  %v542_v51 = vadd.s32 272, %v3124_v1 }
  0x69   :  { %vm1056_vm3 = vmand %vm831_vm11, %vm944_vm12 }
  0x6a   :  { %vm2473_vm4 = vmpackc.low %vm1056_vm3, %vm1055_vm14  ;;  %vm893_vm14 = vcmp.lt.s32.totalorder %v552_v52, %v3138_v7  ;;  %vm894_vm3 = vcmp.lt.s32.totalorder %v553_v53, %v3138_v7  ;;  %v543_v52 = vadd.s32 280, %v3124_v1 }
  0x6b   :  { %2730 = vmatprep.subr.msk.bf16.mxu0 %vm2473_vm4, %v3075_v12  ;;  %vm1039_vm5 = vmand %vm814_vm15, %vm927_vm0  ;;  %vm781_vm0 = vcmp.ge.s32.totalorder %v553_v53, %v3131_v5  ;;  %vm828_vm4 = vcmp.ge.s32.totalorder %v600_v54, %v3131_v5  ;;  %v590_v53 = vadd.s32 656, %v3124_v1 }
  0x6c   :  { %vm1040_vm8 = vmand %vm815_vm1, %vm928_vm2 }
  0x6d   :  { %vm2457_vm11 = vmpackc.low %vm1040_vm8, %vm1039_vm5  ;;  %vm941_vm5 = vcmp.lt.s32.totalorder %v600_v54, %v3138_v7  ;;  %vm942_vm8 = vcmp.lt.s32.totalorder %v601_v55, %v3138_v7  ;;  %v591_v54 = vadd.s32 664, %v3124_v1 }
  0x6e   :  { %2731 = vmatpush3.bf16.msk.msra.mxu0 %vm2457_vm11, %v3075_v12  ;;  %vm1021_vm12 = vmand %vm796_vm6, %vm909_vm7  ;;  %vm829_vm7 = vcmp.ge.s32.totalorder %v601_v55, %v3131_v5  ;;  %vm202_vm11 = vcmp.eq.s32.totalorder %v3314_v40, %v3181_v16  ;;  %v575_v55 = vadd.s32 536, %v3124_v1 }
  0x6f   :  { %vm1022_vm15 = vmand %vm797_vm9, %vm910_vm10 }
  0x70   :  { %vm2411_vm1 = vmpackc.low %vm1022_vm15, %vm1021_vm12  ;;  %vm209_vm12 = vcmp.eq.s32.totalorder %v3314_v40, %v3188_v17  ;;  %vm925_vm15 = vcmp.lt.s32.totalorder %v584_v56, %v3138_v7 }
  0x71   :  { %2668 = vmatprep.subr.msk.bf16.mxu1 %vm2411_vm1, %v3075_v12  ;;  %vm1005_vm2 = vmand %vm780_vm13, %vm893_vm14  ;;  %vm812_vm14 = vcmp.ge.s32.totalorder %v584_v56, %v3131_v5  ;;  %vm926_vm1 = vcmp.lt.s32.totalorder %v585_v57, %v3138_v7  ;;  %v556_v56 = vadd.s32 384, %v3124_v1 }
  0x72   :  { %vm1006_vm6 = vmand %vm781_vm0, %vm894_vm3  ;;  %vm813_vm3 = vcmp.ge.s32.totalorder %v585_v57, %v3131_v5  ;;  %v540_v57 = vadd.s32 256, %v3124_v1 }
  0x73   :  { %vm2395_vm9 = vmpackc.low %vm1006_vm6, %vm1005_vm2  ;;  %vm208_vm6 = vcmp.eq.s32.totalorder %v3323_v41, %v3188_v17 }
  0x74   :  { %2669 = vmatpush3.bf16.msk.msra.mxu1 %vm2395_vm9, %v3075_v12  ;;  %vm1053_vm10 = vmand %vm828_vm4, %vm941_vm5  ;;  %vm201_vm5 = vcmp.eq.s32.totalorder %v3323_v41, %v3181_v16  ;;  %vm907_vm9 = vcmp.lt.s32.totalorder %v566_v58, %v3138_v7 }
  0x75   :  { %vm1054_vm13 = vmand %vm829_vm7, %vm942_vm8  ;;  %vm794_vm8 = vcmp.ge.s32.totalorder %v566_v58, %v3131_v5  ;;  %v541_v58 = vadd.s32 264, %v3124_v1 }
  0x76   :  { %vm2475_vm0 = vmpackc.low %vm1054_vm13, %vm1053_vm10  ;;  %vm795_vm13 = vcmp.ge.s32.totalorder %v567_v59, %v3131_v5 }
  0x77   :  { %2732 = vmatprep.subr.msk.bf16.mxu0 %vm2475_vm0, %v3075_v12  ;;  %vm2381_vm2 = vmpackc.low %vm209_vm12, %vm202_vm11  ;;  %vm908_vm11 = vcmp.lt.s32.totalorder %v567_v59, %v3138_v7  ;;  %vm153_vm0 = vcmp.eq.s32.totalorder %v3314_v40, %v3284_v33  ;;  %v117_v59 = vsub.s32 3, %v3124_v1 }
  0x78   :  { %2382 = vmatprep.mubr.msk.bf16.mxu1 %vm2381_vm2, %v3075_v12  ;;  %vm1037_vm4 = vmand %vm812_vm14, %vm925_vm15  ;;  %vm146_vm15 = vcmp.eq.s32.totalorder %v3314_v40, %v3277_v32  ;;  %vm891_vm2 = vcmp.lt.s32.totalorder %v550_v60, %v3138_v7 }
  0x79   :  { %vm1038_vm7 = vmand %vm813_vm3, %vm926_vm1  ;;  %vm778_vm1 = vcmp.ge.s32.totalorder %v550_v60, %v3131_v5  ;;  %v588_v60 = vadd.s32 640, %v3124_v1 }
  0x7a   :  { %vm2459_vm10 = vmpackc.low %vm1038_vm7, %vm1037_vm4  ;;  %vm779_vm7 = vcmp.ge.s32.totalorder %v551_v61, %v3131_v5 }
  0x7b   :  { %2733 = vmatpush3.bf16.msk.msra.mxu0 %vm2459_vm10, %v3075_v12  ;;  %vm2383_vm12 = vmpackc.low %vm208_vm6, %vm201_vm5  ;;  %vm892_vm5 = vcmp.lt.s32.totalorder %v551_v61, %v3138_v7  ;;  %vm152_vm10 = vcmp.eq.s32.totalorder %v3323_v41, %v3284_v33  ;;  %v589_v61 = vadd.s32 648, %v3124_v1 }
  0x7c   :  { %2384 = vmatmul.mubr.msk.bf16.gmra.mxu1 %vm2383_vm12, %v3075_v12  ;;  %vm1019_vm14 = vmand %vm794_vm8, %vm907_vm9  ;;  %vm145_vm9 = vcmp.eq.s32.totalorder %v3323_v41, %v3277_v32  ;;  %vm939_vm12 = vcmp.lt.s32.totalorder %v598_v62, %v3138_v7 }
  0x7d   :  { %vm1020_vm3 = vmand %vm795_vm13, %vm908_vm11  ;;  %vm826_vm11 = vcmp.ge.s32.totalorder %v598_v62, %v3131_v5  ;;  %v3625_v62 = vrot.slane %v3301_v37, %v117_v59 }
  0x7e   :  { %vm2413_vm4 = vmpackc.low %vm1020_vm3, %vm1019_vm14 }
  0x7f   :  { %2670 = vmatprep.subr.msk.bf16.mxu1 %vm2413_vm4, %v3075_v12  ;;  %vm2365_vm6 = vmpackc.low %vm153_vm0, %vm146_vm15  ;;  %vm827_vm15 = vcmp.ge.s32.totalorder %v599_v63, %v3131_v5  ;;  %vm940_vm0 = vcmp.lt.s32.totalorder %v599_v63, %v3138_v7  ;;  %vm923_vm4 = vcmp.lt.s32.totalorder %v582_v0, %v3138_v7  ;;  %v113_v63 = vsub.s32 2, %v3124_v1 }
  0x80   :  { %2366 = vmatprep.mubr.msk.bf16.mxu0 %vm2365_vm6, %v3075_v12  ;;  %vm1003_vm8 = vmand %vm778_vm1, %vm891_vm2  ;;  %vm810_vm2 = vcmp.ge.s32.totalorder %v582_v0, %v3131_v5  ;;  %vm924_vm6 = vcmp.lt.s32.totalorder %v583_v3, %v3138_v7  ;;  %v572_v0 = vadd.s32 512, %v3124_v1 }
  0x81   :  { %vm1004_vm13 = vmand %vm779_vm7, %vm892_vm5  ;;  %vm811_vm5 = vcmp.ge.s32.totalorder %v583_v3, %v3131_v5  ;;  %v573_v3 = vadd.s32 520, %v3124_v1 }
  0x82   :  { %vm2397_vm14 = vmpackc.low %vm1004_vm13, %vm1003_vm8  ;;  %vm905_vm13 = vcmp.lt.s32.totalorder %v564_v4, %v3138_v7 }
  0x83   :  { %2671 = vmatpush3.bf16.msk.msra.mxu1 %vm2397_vm14, %v3075_v12  ;;  %vm2367_vm3 = vmpackc.low %vm152_vm10, %vm145_vm9  ;;  %vm792_vm10 = vcmp.ge.s32.totalorder %v564_v4, %v3131_v5  ;;  %vm906_vm14 = vcmp.lt.s32.totalorder %v565_v9, %v3138_v7  ;;  %v3641_v4 = vrot.slane %v3301_v37, %v113_v63 }
  0x84   :  { %2368 = vmatmul.mubr.msk.bf16.gmra.mxu0 %vm2367_vm3, %v3075_v12  ;;  %vm1051_vm1 = vmand %vm826_vm11, %vm939_vm12  ;;  %vm793_vm12 = vcmp.ge.s32.totalorder %v565_v9, %v3131_v5  ;;  %vm776_vm3 = vcmp.ge.s32.totalorder %v548_v10, %v3131_v5  ;;  %v125_v9 = vsub.s32 5, %v3124_v1 }
  0x85   :  { %vm1052_vm7 = vmand %vm827_vm15, %vm940_vm0 }
  0x86   :  { %vm2477_vm8 = vmpackc.low %vm1052_vm7, %vm1051_vm1  ;;  %vm889_vm1 = vcmp.lt.s32.totalorder %v548_v10, %v3138_v7  ;;  %vm890_vm7 = vcmp.lt.s32.totalorder %v549_v14, %v3138_v7  ;;  %v618_v10 = vadd.s32 880, %v3124_v1 }
  0x87   :  { %2734 = vmatprep.subr.msk.bf16.mxu0 %vm2477_vm8, %v3075_v12  ;;  %vm1035_vm9 = vmand %vm810_vm2, %vm923_vm4  ;;  %vm777_vm4 = vcmp.ge.s32.totalorder %v549_v14, %v3131_v5  ;;  %vm824_vm8 = vcmp.ge.s32.totalorder %v596_v15, %v3131_v5  ;;  %v121_v14 = vsub.s32 4, %v3124_v1 }
  0x88   :  { %vm1036_vm11 = vmand %vm811_vm5, %vm924_vm6 }
  0x89   :  { %vm2461_vm15 = vmpackc.low %vm1036_vm11, %vm1035_vm9  ;;  %vm937_vm9 = vcmp.lt.s32.totalorder %v596_v15, %v3138_v7  ;;  %vm938_vm11 = vcmp.lt.s32.totalorder %v597_v18, %v3138_v7  ;;  %v619_v15 = vadd.s32 888, %v3124_v1 }
  0x8a   :  { %2735 = vmatpush3.bf16.msk.msra.mxu0 %vm2461_vm15, %v3075_v12  ;;  %vm1017_vm0 = vmand %vm792_vm10, %vm905_vm13  ;;  %vm825_vm13 = vcmp.ge.s32.totalorder %v597_v18, %v3131_v5  ;;  %vm216_vm15 = vcmp.eq.s32.totalorder %v3314_v40, %v3157_v11  ;;  %v3658_v18 = vrot.slane %v3301_v37, %v125_v9 }
  0x8b   :  { %vm1018_vm2 = vmand %vm793_vm12, %vm906_vm14 }
  0x8c   :  { %vm2415_vm5 = vmpackc.low %vm1018_vm2, %vm1017_vm0  ;;  %vm223_vm0 = vcmp.eq.s32.totalorder %v3314_v40, %v3164_v13  ;;  %vm921_vm2 = vcmp.lt.s32.totalorder %v580_v19, %v3138_v7 }
  0x8d   :  { %2672 = vmatprep.subr.msk.bf16.mxu1 %vm2415_vm5, %v3075_v12  ;;  %vm1001_vm6 = vmand %vm776_vm3, %vm889_vm1  ;;  %vm808_vm1 = vcmp.ge.s32.totalorder %v580_v19, %v3131_v5  ;;  %vm922_vm5 = vcmp.lt.s32.totalorder %v581_v22, %v3138_v7  ;;  %v3663_v19 = vrot.slane %v3301_v37, %v121_v14  ;;  %v616_v37 = vadd.s32 864, %v3124_v1 }
  0x8e   :  { %vm1002_vm10 = vmand %vm777_vm4, %vm890_vm7  ;;  %vm809_vm7 = vcmp.ge.s32.totalorder %v581_v22, %v3131_v5 }
  0x8f   :  { %vm2399_vm12 = vmpackc.low %vm1002_vm10, %vm1001_vm6  ;;  %vm222_vm10 = vcmp.eq.s32.totalorder %v3323_v41, %v3164_v13 }
  0x90   :  { %2673 = vmatpush3.bf16.msk.msra.mxu1 %vm2399_vm12, %v3075_v12  ;;  %vm1049_vm14 = vmand %vm824_vm8, %vm937_vm9  ;;  %vm215_vm9 = vcmp.eq.s32.totalorder %v3323_v41, %v3157_v11  ;;  %vm903_vm12 = vcmp.lt.s32.totalorder %v562_v23, %v3138_v7 }
  0x91   :  { %vm1050_vm3 = vmand %vm825_vm13, %vm938_vm11  ;;  %vm790_vm11 = vcmp.ge.s32.totalorder %v562_v23, %v3131_v5  ;;  %v617_v23 = vadd.s32 872, %v3124_v1 }
  0x92   :  { %vm2479_vm4 = vmpackc.low %vm1050_vm3, %vm1049_vm14  ;;  %vm791_vm3 = vcmp.ge.s32.totalorder %v563_v26, %v3131_v5 }
  0x93   :  { %2736 = vmatprep.subr.msk.bf16.mxu0 %vm2479_vm4, %v3075_v12  ;;  %vm2385_vm6 = vmpackc.low %vm223_vm0, %vm216_vm15  ;;  %vm904_vm15 = vcmp.lt.s32.totalorder %v563_v26, %v3138_v7  ;;  %vm167_vm4 = vcmp.eq.s32.totalorder %v3314_v40, %v3260_v29 }
  0x94   :  { %2386 = vmatprep.mubr.msk.bf16.mxu1 %vm2385_vm6, %v3075_v12  ;;  %vm1033_vm8 = vmand %vm808_vm1, %vm921_vm2  ;;  %vm160_vm2 = vcmp.eq.s32.totalorder %v3314_v40, %v3253_v28  ;;  %vm887_vm6 = vcmp.lt.s32.totalorder %v546_v27, %v3138_v7 }
  0x95   :  { %vm1034_vm13 = vmand %vm809_vm7, %vm922_vm5  ;;  %vm774_vm5 = vcmp.ge.s32.totalorder %v546_v27, %v3131_v5  ;;  %v614_v27 = vadd.s32 848, %v3124_v1 }
  0x96   :  { %vm2463_vm14 = vmpackc.low %vm1034_vm13, %vm1033_vm8  ;;  %vm775_vm13 = vcmp.ge.s32.totalorder %v547_v30, %v3131_v5 }
  0x97   :  { %2737 = vmatpush3.bf16.msk.msra.mxu0 %vm2463_vm14, %v3075_v12  ;;  %vm2387_vm0 = vmpackc.low %vm222_vm10, %vm215_vm9  ;;  %vm888_vm9 = vcmp.lt.s32.totalorder %v547_v30, %v3138_v7  ;;  %vm166_vm14 = vcmp.eq.s32.totalorder %v3323_v41, %v3260_v29  ;;  %v615_v30 = vadd.s32 856, %v3124_v1 }
  0x98   :  { %2388 = vmatmul.mubr.msk.bf16.gmra.mxu1 %vm2387_vm0, %v3075_v12  ;;  %vm1015_vm1 = vmand %vm790_vm11, %vm903_vm12  ;;  %vm159_vm12 = vcmp.eq.s32.totalorder %v3323_v41, %v3253_v28  ;;  %vm935_vm0 = vcmp.lt.s32.totalorder %v594_v31, %v3138_v7 }
  0x99   :  { %vm1016_vm7 = vmand %vm791_vm3, %vm904_vm15  ;;  %vm822_vm15 = vcmp.ge.s32.totalorder %v594_v31, %v3131_v5 }
  0x9a   :  { %vm2417_vm8 = vmpackc.low %vm1016_vm7, %vm1015_vm1 }
  0x9b   :  { %2674 = vmatprep.subr.msk.bf16.mxu1 %vm2417_vm8, %v3075_v12  ;;  %vm2369_vm10 = vmpackc.low %vm167_vm4, %vm160_vm2  ;;  %vm823_vm2 = vcmp.ge.s32.totalorder %v595_v34, %v3131_v5  ;;  %vm936_vm4 = vcmp.lt.s32.totalorder %v595_v34, %v3138_v7  ;;  %vm919_vm8 = vcmp.lt.s32.totalorder %v578_v35, %v3138_v7  ;;  %v612_v34 = vadd.s32 832, %v3124_v1 }
  0x9c   :  { %2370 = vmatprep.mubr.msk.bf16.mxu0 %vm2369_vm10, %v3075_v12  ;;  %vm999_vm11 = vmand %vm774_vm5, %vm887_vm6  ;;  %vm806_vm6 = vcmp.ge.s32.totalorder %v578_v35, %v3131_v5  ;;  %vm920_vm10 = vcmp.lt.s32.totalorder %v579_v36, %v3138_v7  ;;  %v613_v35 = vadd.s32 840, %v3124_v1 }
  0x9d   :  { %vm1000_vm3 = vmand %vm775_vm13, %vm888_vm9  ;;  %vm807_vm9 = vcmp.ge.s32.totalorder %v579_v36, %v3131_v5 }
  0x9e   :  { %vm2401_vm1 = vmpackc.low %vm1000_vm3, %vm999_vm11  ;;  %vm901_vm3 = vcmp.lt.s32.totalorder %v560_v38, %v3138_v7 }
  0x9f   :  { %2675 = vmatpush3.bf16.msk.msra.mxu1 %vm2401_vm1, %v3075_v12  ;;  %vm2371_vm7 = vmpackc.low %vm166_vm14, %vm159_vm12  ;;  %vm788_vm14 = vcmp.ge.s32.totalorder %v560_v38, %v3131_v5  ;;  %vm902_vm1 = vcmp.lt.s32.totalorder %v561_v42, %v3138_v7  ;;  %v610_v38 = vadd.s32 816, %v3124_v1 }
  0xa0   :  { %2372 = vmatmul.mubr.msk.bf16.gmra.mxu0 %vm2371_vm7, %v3075_v12  ;;  %vm1047_vm5 = vmand %vm822_vm15, %vm935_vm0  ;;  %vm789_vm0 = vcmp.ge.s32.totalorder %v561_v42, %v3131_v5  ;;  %vm772_vm7 = vcmp.ge.s32.totalorder %v544_v43, %v3131_v5  ;;  %v611_v42 = vadd.s32 824, %v3124_v1 }
  0xa1   :  { %vm1048_vm13 = vmand %vm823_vm2, %vm936_vm4 }
  0xa2   :  { %vm2481_vm11 = vmpackc.low %vm1048_vm13, %vm1047_vm5  ;;  %vm885_vm5 = vcmp.lt.s32.totalorder %v544_v43, %v3138_v7  ;;  %vm886_vm13 = vcmp.lt.s32.totalorder %v545_v44, %v3138_v7 }
  0xa3   :  { %2738 = vmatprep.subr.msk.bf16.mxu0 %vm2481_vm11, %v3075_v12  ;;  %vm1031_vm12 = vmand %vm806_vm6, %vm919_vm8  ;;  %vm773_vm8 = vcmp.ge.s32.totalorder %v545_v44, %v3131_v5  ;;  %vm820_vm11 = vcmp.ge.s32.totalorder %v592_v45, %v3131_v5 }
  0xa4   :  { %vm1032_vm15 = vmand %vm807_vm9, %vm920_vm10 }
  0xa5   :  { %vm2465_vm2 = vmpackc.low %vm1032_vm15, %vm1031_vm12  ;;  %vm933_vm12 = vcmp.lt.s32.totalorder %v592_v45, %v3138_v7  ;;  %vm934_vm15 = vcmp.lt.s32.totalorder %v593_v46, %v3138_v7  ;;  %v608_v45 = vadd.s32 800, %v3124_v1 }
  0xa6   :  { %2739 = vmatpush3.bf16.msk.msra.mxu0 %vm2465_vm2, %v3075_v12  ;;  %vm1013_vm4 = vmand %vm788_vm14, %vm901_vm3  ;;  %vm821_vm3 = vcmp.ge.s32.totalorder %v593_v46, %v3131_v5  ;;  %vm230_vm2 = vcmp.eq.s32.totalorder %v3314_v40, %v3134_v6 }
  0xa7   :  { %vm1014_vm6 = vmand %vm789_vm0, %vm902_vm1 }
  0xa8   :  { %vm2419_vm9 = vmpackc.low %vm1014_vm6, %vm1013_vm4  ;;  %vm237_vm4 = vcmp.eq.s32.totalorder %v3314_v40, %v3141_v8  ;;  %vm917_vm6 = vcmp.lt.s32.totalorder %v576_v47, %v3138_v7 }
  0xa9   :  { %2676 = vmatprep.subr.msk.bf16.mxu1 %vm2419_vm9, %v3075_v12  ;;  %vm997_vm10 = vmand %vm772_vm7, %vm885_vm5  ;;  %vm804_vm5 = vcmp.ge.s32.totalorder %v576_v47, %v3131_v5  ;;  %vm918_vm9 = vcmp.lt.s32.totalorder %v577_v48, %v3138_v7  ;;  %v609_v47 = vadd.s32 808, %v3124_v1 }
  0xaa   :  { %vm998_vm14 = vmand %vm773_vm8, %vm886_vm13  ;;  %vm805_vm13 = vcmp.ge.s32.totalorder %v577_v48, %v3131_v5 }
  0xab   :  { %vm2403_vm0 = vmpackc.low %vm998_vm14, %vm997_vm10  ;;  %vm236_vm14 = vcmp.eq.s32.totalorder %v3323_v41, %v3141_v8 }
  0xac   :  { %2677 = vmatpush3.bf16.msk.msra.mxu1 %vm2403_vm0, %v3075_v12  ;;  %vm1045_vm1 = vmand %vm820_vm11, %vm933_vm12  ;;  %vm229_vm12 = vcmp.eq.s32.totalorder %v3323_v41, %v3134_v6  ;;  %vm899_vm0 = vcmp.lt.s32.totalorder %v558_v49, %v3138_v7 }
  0xad   :  { %vm1046_vm7 = vmand %vm821_vm3, %vm934_vm15  ;;  %vm786_vm15 = vcmp.ge.s32.totalorder %v558_v49, %v3131_v5 }
  0xae   :  { %vm2483_vm8 = vmpackc.low %vm1046_vm7, %vm1045_vm1  ;;  %vm787_vm7 = vcmp.ge.s32.totalorder %v559_v50, %v3131_v5 }
  0xaf   :  { %2740 = vmatprep.subr.msk.bf16.mxu0 %vm2483_vm8, %v3075_v12  ;;  %vm2389_vm10 = vmpackc.low %vm237_vm4, %vm230_vm2  ;;  %vm900_vm2 = vcmp.lt.s32.totalorder %v559_v50, %v3138_v7  ;;  %vm181_vm8 = vcmp.eq.s32.totalorder %v3314_v40, %v3236_v25 }
  0xb0   :  { %2390 = vmatprep.mubr.msk.bf16.mxu1 %vm2389_vm10, %v3075_v12  ;;  %vm1029_vm11 = vmand %vm804_vm5, %vm917_vm6  ;;  %vm174_vm6 = vcmp.eq.s32.totalorder %v3314_v40, %v3229_v24  ;;  %vm883_vm10 = vcmp.lt.s32.totalorder %v542_v51, %v3138_v7  ;;  %v574_v40 = vadd.s32 528, %v3124_v1 }
  0xb1   :  { %vm1030_vm3 = vmand %vm805_vm13, %vm918_vm9  ;;  %vm770_vm9 = vcmp.ge.s32.totalorder %v542_v51, %v3131_v5  ;;  %v606_v51 = vadd.s32 784, %v3124_v1 }
  0xb2   :  { %vm2467_vm1 = vmpackc.low %vm1030_vm3, %vm1029_vm11  ;;  %vm771_vm3 = vcmp.ge.s32.totalorder %v543_v52, %v3131_v5 }
  0xb3   :  { %2741 = vmatpush3.bf16.msk.msra.mxu0 %vm2467_vm1, %v3075_v12  ;;  %vm2391_vm4 = vmpackc.low %vm236_vm14, %vm229_vm12  ;;  %vm884_vm12 = vcmp.lt.s32.totalorder %v543_v52, %v3138_v7  ;;  %vm180_vm1 = vcmp.eq.s32.totalorder %v3323_v41, %v3236_v25  ;;  %v607_v52 = vadd.s32 792, %v3124_v1 }
  0xb4   :  { %2392 = vmatmul.mubr.msk.bf16.gmra.mxu1 %vm2391_vm4, %v3075_v12  ;;  %vm1011_vm5 = vmand %vm786_vm15, %vm899_vm0  ;;  %vm173_vm0 = vcmp.eq.s32.totalorder %v3323_v41, %v3229_v24  ;;  %vm931_vm4 = vcmp.lt.s32.totalorder %v590_v53, %v3138_v7  ;;  %v557_v41 = vadd.s32 392, %v3124_v1 }
  0xb5   :  { %vm1012_vm13 = vmand %vm787_vm7, %vm900_vm2  ;;  %vm818_vm2 = vcmp.ge.s32.totalorder %v590_v53, %v3131_v5 }
  0xb6   :  { %vm2421_vm11 = vmpackc.low %vm1012_vm13, %vm1011_vm5 }
  0xb7   :  { %2678 = vmatprep.subr.msk.bf16.mxu1 %vm2421_vm11, %v3075_v12  ;;  %vm2373_vm14 = vmpackc.low %vm181_vm8, %vm174_vm6  ;;  %vm819_vm6 = vcmp.ge.s32.totalorder %v591_v54, %v3131_v5  ;;  %vm932_vm8 = vcmp.lt.s32.totalorder %v591_v54, %v3138_v7  ;;  %vm915_vm11 = vcmp.lt.s32.totalorder %v574_v40, %v3138_v7 }
  0xb8   :  { %2374 = vmatprep.mubr.msk.bf16.mxu0 %vm2373_vm14, %v3075_v12  ;;  %vm995_vm15 = vmand %vm770_vm9, %vm883_vm10  ;;  %vm802_vm10 = vcmp.ge.s32.totalorder %v574_v40, %v3131_v5  ;;  %vm916_vm14 = vcmp.lt.s32.totalorder %v575_v55, %v3138_v7 }
  0xb9   :  { %vm996_vm7 = vmand %vm771_vm3, %vm884_vm12  ;;  %vm803_vm12 = vcmp.ge.s32.totalorder %v575_v55, %v3131_v5  ;;  %v604_v55 = vadd.s32 768, %v3124_v1 }
  0xba   :  { %vm2405_vm5 = vmpackc.low %vm996_vm7, %vm995_vm15  ;;  %vm897_vm7 = vcmp.lt.s32.totalorder %v556_v56, %v3138_v7 }
  0xbb   :  { %2679 = vmatpush3.bf16.msk.msra.mxu1 %vm2405_vm5, %v3075_v12  ;;  %vm2375_vm13 = vmpackc.low %vm180_vm1, %vm173_vm0  ;;  %vm784_vm1 = vcmp.ge.s32.totalorder %v556_v56, %v3131_v5  ;;  %vm898_vm5 = vcmp.lt.s32.totalorder %v557_v41, %v3138_v7  ;;  %v605_v56 = vadd.s32 776, %v3124_v1 }
  0xbc   :  { %2376 = vmatmul.mubr.msk.bf16.gmra.mxu0 %vm2375_vm13, %v3075_v12  ;;  %vm1043_vm9 = vmand %vm818_vm2, %vm931_vm4  ;;  %vm785_vm4 = vcmp.ge.s32.totalorder %v557_v41, %v3131_v5  ;;  %vm768_vm13 = vcmp.ge.s32.totalorder %v540_v57, %v3131_v5  ;;  %v129_v41 = vsub.s32 6, %v3124_v1 }
  0xbd   :  { %vm1044_vm3 = vmand %vm819_vm6, %vm932_vm8 }
  0xbe   :  { %vm2485_vm15 = vmpackc.low %vm1044_vm3, %vm1043_vm9  ;;  %vm881_vm9 = vcmp.lt.s32.totalorder %v540_v57, %v3138_v7  ;;  %vm882_vm3 = vcmp.lt.s32.totalorder %v541_v58, %v3138_v7  ;;  %v2961_v57 = vld [vmem:[#allocation3] sm:$0xff] }
  0xbf   :  { %2742 = vmatprep.subr.msk.bf16.mxu0 %vm2485_vm15, %v3075_v12  ;;  %vm1027_vm0 = vmand %vm802_vm10, %vm915_vm11  ;;  %vm769_vm11 = vcmp.ge.s32.totalorder %v541_v58, %v3131_v5  ;;  %vm816_vm15 = vcmp.ge.s32.totalorder %v588_v60, %v3131_v5  ;;  %v130_v58 = vrot.slane %v2961_v57, %v129_v41 }
  0xc0   :  { %vm1028_vm2 = vmand %vm803_vm12, %vm916_vm14 }
  0xc1   :  { %vm2469_vm6 = vmpackc.low %vm1028_vm2, %vm1027_vm0  ;;  %vm929_vm0 = vcmp.lt.s32.totalorder %v588_v60, %v3138_v7  ;;  %vm930_vm2 = vcmp.lt.s32.totalorder %v589_v61, %v3138_v7 }
  0xc2   :  { %2743 = vmatpush3.bf16.msk.msra.mxu0 %vm2469_vm6, %v3075_v12  ;;  %vm1009_vm8 = vmand %vm784_vm1, %vm897_vm7  ;;  %vm817_vm7 = vcmp.ge.s32.totalorder %v589_v61, %v3131_v5  ;;  %vm134_vm6 = vcmp.eq.s32.totalorder %v3625_v62, %v3124_v1 }
  0xc3   :  { %vm1010_vm10 = vmand %vm785_vm4, %vm898_vm5 }
  0xc4   :  { %vm2423_vm12 = vmpackc.low %vm1010_vm10, %vm1009_vm8  ;;  %vm141_vm8 = vcmp.eq.s32.totalorder %v3625_v62, %v3309_v39  ;;  %vm913_vm10 = vcmp.lt.s32.totalorder %v572_v0, %v3138_v7 }
  0xc5   :  { %2680 = vmatprep.subr.msk.bf16.mxu1 %vm2423_vm12, %v3075_v12  ;;  %vm993_vm14 = vmand %vm768_vm13, %vm881_vm9  ;;  %vm800_vm9 = vcmp.ge.s32.totalorder %v572_v0, %v3131_v5  ;;  %vm914_vm12 = vcmp.lt.s32.totalorder %v573_v3, %v3138_v7 }
  0xc6   :  { %vm994_vm1 = vmand %vm769_vm11, %vm882_vm3  ;;  %vm801_vm3 = vcmp.ge.s32.totalorder %v573_v3, %v3131_v5 }
  0xc7   :  { %vm2407_vm4 = vmpackc.low %vm994_vm1, %vm993_vm14  ;;  %vm140_vm1 = vcmp.eq.s32.totalorder %v3641_v4, %v3309_v39 }
  0xc8   :  { %2681 = vmatpush3.bf16.msk.msra.mxu1 %vm2407_vm4, %v3075_v12  ;;  %vm1041_vm5 = vmand %vm816_vm15, %vm929_vm0  ;;  %vm133_vm0 = vcmp.eq.s32.totalorder %v3641_v4, %v3124_v1  ;;  %vm959_vm4 = vcmp.lt.s32.totalorder %v618_v10, %v3138_v7 }
  0xc9   :  { %vm1042_vm13 = vmand %vm817_vm7, %vm930_vm2  ;;  %vm846_vm2 = vcmp.ge.s32.totalorder %v618_v10, %v3131_v5 }
  0xca   :  { %vm2487_vm11 = vmpackc.low %vm1042_vm13, %vm1041_vm5 }
  0xcb   :  { %2744 = vmatprep.subr.msk.bf16.mxu0 %vm2487_vm11, %v3075_v12  ;;  %vm2425_vm14 = vmpackc.low %vm141_vm8, %vm134_vm6  ;;  %vm847_vm6 = vcmp.ge.s32.totalorder %v619_v15, %v3131_v5  ;;  %vm960_vm8 = vcmp.lt.s32.totalorder %v619_v15, %v3138_v7  ;;  %vm143_vm11 = vcmp.eq.s32.totalorder %v3658_v18, %v3309_v39 }
  0xcc   :  { %2426 = vmatprep.mubr.msk.bf16.mxu1 %vm2425_vm14, %v3075_v12  ;;  %vm1025_vm15 = vmand %vm800_vm9, %vm913_vm10  ;;  %vm136_vm10 = vcmp.eq.s32.totalorder %v3658_v18, %v3124_v1  ;;  %vm142_vm14 = vcmp.eq.s32.totalorder %v3663_v19, %v3309_v39 }
  0xcd   :  { %vm1026_vm7 = vmand %vm801_vm3, %vm914_vm12  ;;  %vm135_vm12 = vcmp.eq.s32.totalorder %v3663_v19, %v3124_v1 }
  0xce   :  { %vm2471_vm5 = vmpackc.low %vm1026_vm7, %vm1025_vm15 }
  0xcf   :  { %2745 = vmatpush3.bf16.msk.msra.mxu0 %vm2471_vm5, %v3075_v12  ;;  %vm2427_vm13 = vmpackc.low %vm140_vm1, %vm133_vm0  ;;  %vm148_vm0 = vcmp.eq.s32.totalorder %v3625_v62, %v3277_v32  ;;  %vm155_vm1 = vcmp.eq.s32.totalorder %v3625_v62, %v3284_v33 }
  0xd0   :  { %2428 = vmatmul.mubr.msk.bf16.vlgmr.msra.gmra.mxu1 %vm2427_vm13, %v3075_v12  ;;  %vm3669_vm9 = vmand %vm846_vm2, %vm959_vm4  ;;  %vm147_vm2 = vcmp.eq.s32.totalorder %v3641_v4, %v3277_v32  ;;  %vm154_vm4 = vcmp.eq.s32.totalorder %v3641_v4, %v3284_v33 }
  0xd1   :  { %vm1072_vm3 = vmand %vm847_vm6, %vm960_vm8  ;;  %vm844_vm6 = vcmp.ge.s32.totalorder %v616_v37, %v3131_v5  ;;  %vm957_vm8 = vcmp.lt.s32.totalorder %v616_v37, %v3138_v7 }
  0xd2   :  { %vm2521_vm15 = vmpackc.low %vm1072_vm3, %vm3669_vm9  ;;  %vm845_vm9 = vcmp.ge.s32.totalorder %v617_v23, %v3131_v5 }
  0xd3   :  { %2836 = vmatprep.subr.msk.bf16.mxu1 %vm2521_vm15, %v3075_v12  ;;  %vm2489_vm7 = vmpackc.low %vm143_vm11, %vm136_vm10  ;;  %vm958_vm10 = vcmp.lt.s32.totalorder %v617_v23, %v3138_v7 }
  0xd4   :  { %2490 = vmatprep.mubr.msk.bf16.mxu0 %vm2489_vm7, %v3075_v12  ;;  %2837 = vmatpush3.bf16.msk.msra.mxu1 %vm2521_vm15, %v3075_v12  ;;  %vm2491_vm5 = vmpackc.low %vm142_vm14, %vm135_vm12  ;;  %vm150_vm12 = vcmp.eq.s32.totalorder %v3658_v18, %v3277_v32  ;;  %vm157_vm14 = vcmp.eq.s32.totalorder %v3658_v18, %v3284_v33 }
  0xd5   :  { %2492 = vmatmul.mubr.msk.bf16.vlgmr.msra.gmra.mxu0 %vm2491_vm5, %v3075_v12  ;;  %vm2429_vm13 = vmpackc.low %vm155_vm1, %vm148_vm0  ;;  %vm149_vm0 = vcmp.eq.s32.totalorder %v3663_v19, %v3277_v32  ;;  %vm156_vm1 = vcmp.eq.s32.totalorder %v3663_v19, %v3284_v33 }
  0xd6   :  { %2430 = vmatprep.mubr.msk.bf16.mxu1 %vm2429_vm13, %v3075_v12  ;;  %vm2431_vm11 = vmpackc.low %vm154_vm4, %vm147_vm2  ;;  %vm162_vm2 = vcmp.eq.s32.totalorder %v3625_v62, %v3253_v28  ;;  %vm169_vm4 = vcmp.eq.s32.totalorder %v3625_v62, %v3260_v29 }
  0xd7   :  { %vm3702_vm3 = vmand %vm844_vm6, %vm957_vm8  ;;  %vm161_vm6 = vcmp.eq.s32.totalorder %v3641_v4, %v3253_v28  ;;  %vm168_vm8 = vcmp.eq.s32.totalorder %v3641_v4, %v3260_v29 }
  0xd8   :  { %2432 = vmatmul.mubr.msk.bf16.gmra.mxu1 %vm2431_vm11, %v3075_v12  ;;  %vm1070_vm15 = vmand %vm845_vm9, %vm958_vm10  ;;  %vm842_vm9 = vcmp.ge.s32.totalorder %v614_v27, %v3131_v5  ;;  %vm955_vm10 = vcmp.lt.s32.totalorder %v614_v27, %v3138_v7 }
  0xd9   :  { %vm2523_vm7 = vmpackc.low %vm1070_vm15, %vm3702_vm3  ;;  %vm843_vm3 = vcmp.ge.s32.totalorder %v615_v30, %v3131_v5 }
  0xda   :  { %2838 = vmatprep.subr.msk.bf16.mxu1 %vm2523_vm7, %v3075_v12  ;;  %vm2493_vm5 = vmpackc.low %vm157_vm14, %vm150_vm12  ;;  %vm956_vm12 = vcmp.lt.s32.totalorder %v615_v30, %v3138_v7 }
  0xdb   :  { %2494 = vmatprep.mubr.msk.bf16.mxu0 %vm2493_vm5, %v3075_v12  ;;  %2839 = vmatpush3.bf16.msk.msra.mxu1 %vm2523_vm7, %v3075_v12  ;;  %vm2495_vm13 = vmpackc.low %vm156_vm1, %vm149_vm0  ;;  %vm164_vm0 = vcmp.eq.s32.totalorder %v3658_v18, %v3253_v28  ;;  %vm171_vm1 = vcmp.eq.s32.totalorder %v3658_v18, %v3260_v29 }
  0xdc   :  { %vm2433_vm11 = vmpackc.low %vm169_vm4, %vm162_vm2  ;;  %vm163_vm2 = vcmp.eq.s32.totalorder %v3663_v19, %v3253_v28  ;;  %vm170_vm4 = vcmp.eq.s32.totalorder %v3663_v19, %v3260_v29 }
  0xdd   :  { %2496 = vmatmul.mubr.msk.bf16.gmra.mxu0 %vm2495_vm13, %v3075_v12  ;;  %2434 = vmatprep.mubr.msk.bf16.mxu1 %vm2433_vm11, %v3075_v12  ;;  %vm2435_vm14 = vmpackc.low %vm168_vm8, %vm161_vm6  ;;  %vm176_vm6 = vcmp.eq.s32.totalorder %v3625_v62, %v3229_v24  ;;  %vm183_vm8 = vcmp.eq.s32.totalorder %v3625_v62, %v3236_v25 }
  0xde   :  { %vm3736_vm15 = vmand %vm842_vm9, %vm955_vm10  ;;  %vm175_vm9 = vcmp.eq.s32.totalorder %v3641_v4, %v3229_v24  ;;  %vm182_vm10 = vcmp.eq.s32.totalorder %v3641_v4, %v3236_v25 }
  0xdf   :  { %vm1068_vm7 = vmand %vm843_vm3, %vm956_vm12  ;;  %vm840_vm3 = vcmp.ge.s32.totalorder %v612_v34, %v3131_v5  ;;  %vm953_vm12 = vcmp.lt.s32.totalorder %v612_v34, %v3138_v7 }
  0xe0   :  { %2436 = vmatmul.mubr.msk.bf16.gmra.mxu1 %vm2435_vm14, %v3075_v12  ;;  %vm2525_vm5 = vmpackc.low %vm1068_vm7, %vm3736_vm15  ;;  %vm841_vm15 = vcmp.ge.s32.totalorder %v613_v35, %v3131_v5 }
  0xe1   :  { %2840 = vmatprep.subr.msk.bf16.mxu1 %vm2525_vm5, %v3075_v12  ;;  %vm2497_vm13 = vmpackc.low %vm171_vm1, %vm164_vm0  ;;  %vm954_vm0 = vcmp.lt.s32.totalorder %v613_v35, %v3138_v7 }
  0xe2   :  { %2498 = vmatprep.mubr.msk.bf16.mxu0 %vm2497_vm13, %v3075_v12  ;;  %2841 = vmatpush3.bf16.msk.msra.mxu1 %vm2525_vm5, %v3075_v12  ;;  %vm2499_vm11 = vmpackc.low %vm170_vm4, %vm163_vm2  ;;  %vm178_vm2 = vcmp.eq.s32.totalorder %v3658_v18, %v3229_v24  ;;  %vm185_vm4 = vcmp.eq.s32.totalorder %v3658_v18, %v3236_v25 }
  0xe3   :  { %vm2437_vm14 = vmpackc.low %vm183_vm8, %vm176_vm6  ;;  %vm177_vm6 = vcmp.eq.s32.totalorder %v3663_v19, %v3229_v24  ;;  %vm184_vm8 = vcmp.eq.s32.totalorder %v3663_v19, %v3236_v25 }
  0xe4   :  { %2438 = vmatprep.mubr.msk.bf16.mxu1 %vm2437_vm14, %v3075_v12  ;;  %vm2439_vm1 = vmpackc.low %vm182_vm10, %vm175_vm9  ;;  %vm190_vm9 = vcmp.eq.s32.totalorder %v3625_v62, %v3205_v20  ;;  %vm197_vm10 = vcmp.eq.s32.totalorder %v3625_v62, %v3212_v21 }
  0xe5   :  { %2500 = vmatmul.mubr.msk.bf16.gmra.mxu0 %vm2499_vm11, %v3075_v12  ;;  %vm3770_vm7 = vmand %vm840_vm3, %vm953_vm12  ;;  %vm189_vm3 = vcmp.eq.s32.totalorder %v3641_v4, %v3205_v20  ;;  %vm196_vm12 = vcmp.eq.s32.totalorder %v3641_v4, %v3212_v21 }
  0xe6   :  { %vm1066_vm5 = vmand %vm841_vm15, %vm954_vm0  ;;  %vm838_vm15 = vcmp.ge.s32.totalorder %v610_v38, %v3131_v5  ;;  %vm951_vm0 = vcmp.lt.s32.totalorder %v610_v38, %v3138_v7 }
  0xe7   :  { %vm2527_vm13 = vmpackc.low %vm1066_vm5, %vm3770_vm7 }
  0xe8   :  { %2440 = vmatmul.mubr.msk.bf16.gmra.mxu1 %vm2439_vm1, %v3075_v12  ;;  %2842 = vmatprep.subr.msk.bf16.mxu1 %vm2527_vm13, %v3075_v12  ;;  %vm2501_vm11 = vmpackc.low %vm185_vm4, %vm178_vm2  ;;  %vm839_vm1 = vcmp.ge.s32.totalorder %v611_v42, %v3131_v5  ;;  %vm952_vm2 = vcmp.lt.s32.totalorder %v611_v42, %v3138_v7 }
  0xe9   :  { %2502 = vmatprep.mubr.msk.bf16.mxu0 %vm2501_vm11, %v3075_v12  ;;  %2843 = vmatpush3.bf16.msk.msra.mxu1 %vm2527_vm13, %v3075_v12  ;;  %vm2503_vm14 = vmpackc.low %vm184_vm8, %vm177_vm6  ;;  %vm192_vm6 = vcmp.eq.s32.totalorder %v3658_v18, %v3205_v20  ;;  %vm199_vm8 = vcmp.eq.s32.totalorder %v3658_v18, %v3212_v21 }
  0xea   :  { %vm2441_vm7 = vmpackc.low %vm197_vm10, %vm190_vm9  ;;  %vm191_vm9 = vcmp.eq.s32.totalorder %v3663_v19, %v3205_v20  ;;  %vm198_vm10 = vcmp.eq.s32.totalorder %v3663_v19, %v3212_v21 }
  0xeb   :  { %2442 = vmatprep.mubr.msk.bf16.mxu1 %vm2441_vm7, %v3075_v12  ;;  %vm3803_vm4 = vmpackc.low %vm196_vm12, %vm189_vm3  ;;  %vm204_vm3 = vcmp.eq.s32.totalorder %v3625_v62, %v3181_v16  ;;  %vm211_vm12 = vcmp.eq.s32.totalorder %v3625_v62, %v3188_v17 }
  0xec   :  { %vm3807_vm5 = vmand %vm838_vm15, %vm951_vm0  ;;  %vm203_vm15 = vcmp.eq.s32.totalorder %v3641_v4, %v3181_v16  ;;  %vm210_vm0 = vcmp.eq.s32.totalorder %v3641_v4, %v3188_v17 }
  0xed   :  { %2504 = vmatmul.mubr.msk.bf16.gmra.mxu0 %vm2503_vm14, %v3075_v12  ;;  %vm3817_vm13 = vmand %vm839_vm1, %vm952_vm2  ;;  %vm836_vm1 = vcmp.ge.s32.totalorder %v608_v45, %v3131_v5  ;;  %vm949_vm2 = vcmp.lt.s32.totalorder %v608_v45, %v3138_v7 }
  0xee   :  { %vm2529_vm11 = vmpackc.low %vm3817_vm13, %vm3807_vm5 }
  0xef   :  { %2844 = vmatprep.subr.msk.bf16.mxu1 %vm2529_vm11, %v3075_v12  ;;  %vm2505_vm14 = vmpackc.low %vm199_vm8, %vm192_vm6  ;;  %vm837_vm6 = vcmp.ge.s32.totalorder %v609_v47, %v3131_v5  ;;  %vm950_vm8 = vcmp.lt.s32.totalorder %v609_v47, %v3138_v7 }
  0xf0   :  { %2444 = vmatmul.mubr.msk.bf16.gmra.mxu1 %vm3803_vm4, %v3075_v12  ;;  %2506 = vmatprep.mubr.msk.bf16.mxu0 %vm2505_vm14, %v3075_v12  ;;  %vm3843_vm7 = vmpackc.low %vm198_vm10, %vm191_vm9  ;;  %vm206_vm9 = vcmp.eq.s32.totalorder %v3658_v18, %v3181_v16  ;;  %vm213_vm10 = vcmp.eq.s32.totalorder %v3658_v18, %v3188_v17 }
  0xf1   :  { %2845 = vmatpush3.bf16.msk.msra.mxu1 %vm2529_vm11, %v3075_v12  ;;  %vm2445_vm5 = vmpackc.low %vm211_vm12, %vm204_vm3  ;;  %vm205_vm3 = vcmp.eq.s32.totalorder %v3663_v19, %v3181_v16  ;;  %vm212_vm12 = vcmp.eq.s32.totalorder %v3663_v19, %v3188_v17 }
  0xf2   :  { %2446 = vmatprep.mubr.msk.bf16.mxu1 %vm2445_vm5, %v3075_v12  ;;  %vm3853_vm4 = vmpackc.low %vm210_vm0, %vm203_vm15  ;;  %vm218_vm15 = vcmp.eq.s32.totalorder %v3625_v62, %v3157_v11  ;;  %vm225_vm0 = vcmp.eq.s32.totalorder %v3625_v62, %v3164_v13  ;;  %vm224_vm5 = vcmp.eq.s32.totalorder %v3641_v4, %v3164_v13 }
  0xf3   :  { %vm3857_vm13 = vmand %vm836_vm1, %vm949_vm2  ;;  %vm217_vm2 = vcmp.eq.s32.totalorder %v3641_v4, %v3157_v11 }
  0xf4   :  { %vm1062_vm11 = vmand %vm837_vm6, %vm950_vm8  ;;  %vm834_vm6 = vcmp.ge.s32.totalorder %v606_v51, %v3131_v5  ;;  %vm947_vm8 = vcmp.lt.s32.totalorder %v606_v51, %v3138_v7  ;;  %v2601_v51 = vld [vmem:[#allocation6 + $0x38] sm:$0xff]  }
  0xf5   :  { %2508 = vmatmul.mubr.msk.bf16.gmra.mxu0 %vm3843_vm7, %v3075_v12  ;;  %vm2531_vm14 = vmpackc.low %vm1062_vm11, %vm3857_vm13  ;;  %v2594_v54 = vunpack.c.h.bf16 %v2601_v51  ;;  %v2593_v40 = vunpack.c.l.bf16 %v2601_v51  ;;  %v2596_v51 = vld [vmem:[#allocation6 + $0x10] sm:$0xff]  }
  0xf6   :  { %2846 = vmatprep.subr.msk.bf16.mxu1 %vm2531_vm14, %v3075_v12  ;;  %vm2509_vm1 = vmpackc.low %vm213_vm10, %vm206_vm9  ;;  %vm835_vm9 = vcmp.ge.s32.totalorder %v607_v52, %v3131_v5  ;;  %vm948_vm10 = vcmp.lt.s32.totalorder %v607_v52, %v3138_v7  ;;  %v2600_v52 = vld [vmem:[#allocation6 + $0x30] sm:$0xff]  }
  0xf7   :  { %2510 = vmatprep.mubr.msk.bf16.mxu0 %vm2509_vm1, %v3075_v12  ;;  %2847 = vmatpush3.bf16.msk.msra.mxu1 %vm2531_vm14, %v3075_v12  ;;  %vm3887_vm7 = vmpackc.low %vm212_vm12, %vm205_vm3  ;;  %vm220_vm12 = vcmp.eq.s32.totalorder %v3658_v18, %v3157_v11  ;;  %vm239_vm1 = vcmp.eq.s32.totalorder %v3625_v62, %v3141_v8  ;;  %v2590_v41 = vunpack.c.h.bf16 %v2600_v52 }
  0xf8   :  { %2448 = vmatmul.mubr.msk.bf16.gmra.mxu1 %vm3853_vm4, %v3075_v12  ;;  %vm2449_vm13 = vmpackc.low %vm225_vm0, %vm218_vm15  ;;  %vm227_vm4 = vcmp.eq.s32.totalorder %v3658_v18, %v3164_v13  ;;  %vm232_vm0 = vcmp.eq.s32.totalorder %v3625_v62, %v3134_v6 }
  0xf9   :  { %2450 = vmatprep.mubr.msk.bf16.mxu1 %vm2449_vm13, %v3075_v12  ;;  %vm3899_vm11 = vmpackc.low %vm224_vm5, %vm217_vm2  ;;  %vm219_vm5 = vcmp.eq.s32.totalorder %v3663_v19, %v3157_v11  ;;  %vm945_vm13 = vcmp.lt.s32.totalorder %v604_v55, %v3138_v7 }
  0xfa   :  { %vm3903_vm3 = vmand %vm834_vm6, %vm947_vm8  ;;  %vm226_vm6 = vcmp.eq.s32.totalorder %v3663_v19, %v3164_v13  ;;  %vm832_vm8 = vcmp.ge.s32.totalorder %v604_v55, %v3131_v5 }
  0xfb   :  { %vm1060_vm14 = vmand %vm835_vm9, %vm948_vm10  ;;  %vm946_vm10 = vcmp.lt.s32.totalorder %v605_v56, %v3138_v7 }
  0xfc   :  { %vm2533_vm15 = vmpackc.low %vm1060_vm14, %vm3903_vm3  ;;  %vm241_vm14 = vcmp.eq.s32.totalorder %v3658_v18, %v3141_v8 }
  0xfd   :  { %2512 = vmatmul.mubr.msk.bf16.gmra.mxu0 %vm3887_vm7, %v3075_v12  ;;  %2848 = vmatprep.subr.msk.bf16.mxu1 %vm2533_vm15, %v3075_v12  ;;  %vm2513_vm2 = vmpackc.low %vm227_vm4, %vm220_vm12  ;;  %vm833_vm7 = vcmp.ge.s32.totalorder %v605_v56, %v3131_v5  ;;  %vm234_vm4 = vcmp.eq.s32.totalorder %v3658_v18, %v3134_v6 }
  0xfe   :  { %2514 = vmatprep.mubr.msk.bf16.mxu0 %vm2513_vm2, %v3075_v12  ;;  %2849 = vmatpush3.bf16.msk.msra.mxu1 %vm2533_vm15, %v3075_v12  ;;  %vm2453_vm9 = vmpackc.low %vm239_vm1, %vm232_vm0  ;;  %vm231_vm15 = vcmp.eq.s32.totalorder %v3641_v4, %v3134_v6  ;;  %vm238_vm0 = vcmp.eq.s32.totalorder %v3641_v4, %v3141_v8 }
  0xff   :  { %vm2515_vm3 = vmpackc.low %vm226_vm6, %vm219_vm5  ;;  %vm144_vm5 = vcmp.eq.s32.totalorder %v130_v58, %v3309_v39 }
 0x100   :  { %2452 = vmatmul.mubr.msk.bf16.gmra.mxu1 %vm3899_vm11, %v3075_v12  ;;  %vm1057_vm12 = vmand %vm832_vm8, %vm945_vm13  ;;  %vm137_vm11 = vcmp.eq.s32.totalorder %v130_v58, %v3124_v1 }
 0x101   :  { %2454 = vmatprep.mubr.msk.bf16.mxu1 %vm2453_vm9, %v3075_v12  ;;  %vm1058_vm1 = vmand %vm833_vm7, %vm946_vm10  ;;  %vm233_vm9 = vcmp.eq.s32.totalorder %v3663_v19, %v3134_v6  ;;  %vm240_vm7 = vcmp.eq.s32.totalorder %v3663_v19, %v3141_v8 }
 0x102   :  { %vm2535_vm2 = vmpackc.low %vm1058_vm1, %vm1057_vm12  ;;  %vm151_vm12 = vcmp.eq.s32.totalorder %v130_v58, %v3277_v32  ;;  %vm179_vm1 = vcmp.eq.s32.totalorder %v130_v58, %v3229_v24 }
 0x103   :  { %2850 = vmatprep.subr.msk.bf16.mxu1 %vm2535_vm2, %v3075_v12  ;;  %vm2517_vm6 = vmpackc.low %vm241_vm14, %vm234_vm4  ;;  %vm165_vm4 = vcmp.eq.s32.totalorder %v130_v58, %v3253_v28  ;;  %vm172_vm14 = vcmp.eq.s32.totalorder %v130_v58, %v3260_v29 }
 0x104   :  { %vm2455_vm8 = vmpackc.low %vm238_vm0, %vm231_vm15  ;;  %2851 = vmatpush3.bf16.msk.msra.mxu1 %vm2535_vm2, %v3075_v12  ;;  %vm186_vm2 = vcmp.eq.s32.totalorder %v130_v58, %v3236_v25 }
 0x105   :  { %2516 = vmatmul.mubr.msk.bf16.gmra.mxu0 %vm2515_vm3, %v3075_v12  ;;  %vm2537_vm13 = vmpackc.low %vm144_vm5, %vm137_vm11  ;;  %vm158_vm3 = vcmp.eq.s32.totalorder %v130_v58, %v3284_v33  ;;  %vm193_vm11 = vcmp.eq.s32.totalorder %v130_v58, %v3205_v20  ;;  %vm200_vm5 = vcmp.eq.s32.totalorder %v130_v58, %v3212_v21 }
 0x106   :  { %2518 = vmatprep.mubr.msk.bf16.mxu0 %vm2517_vm6, %v3075_v12  ;;  %vm2519_vm10 = vmpackc.low %vm240_vm7, %vm233_vm9  ;;  %vm214_vm9 = vcmp.eq.s32.totalorder %v130_v58, %v3188_v17  ;;  %vm221_vm7 = vcmp.eq.s32.totalorder %v130_v58, %v3157_v11 }
 0x107   :  { %vm2539_vm15 = vmpackc.low %vm158_vm3, %vm151_vm12 }
 0x108   :  { %2456 = vmatmul.mubr.msk.bf16.gmra.mxu1 %vm2455_vm8, %v3075_v12  ;;  %vm2541_vm0 = vmpackc.low %vm172_vm14, %vm165_vm4  ;;  %vm235_vm4 = vcmp.eq.s32.totalorder %v130_v58, %v3134_v6  ;;  %vm242_vm14 = vcmp.eq.s32.totalorder %v130_v58, %v3141_v8 }
 0x109   :  { %2852 = vmatprep.mubr.msk.bf16.mxu1 %vm2537_vm13, %v3075_v12  ;;  %vm2543_vm6 = vmpackc.low %vm186_vm2, %vm179_vm1  ;;  %vm207_vm13 = vcmp.eq.s32.totalorder %v130_v58, %v3181_v16  ;;  %vm3077_vm1 = vmmov 0  }
 0x10a   :  { %vm2545_vm8 = vmpackc.low %vm200_vm5, %vm193_vm11 }
 0x10b   :  { %vm2547_vm12 = vmpackc.low %vm214_vm9, %vm207_vm13 }
 0x10d   :  { %2520 = vmatmul.mubr.msk.bf16.gmra.mxu0 %vm2519_vm10, %v3075_v12  ;;  %vm228_vm10 = vcmp.eq.s32.totalorder %v130_v58, %v3164_v13  ;;  %v2599_v58 = vld [vmem:[#allocation6 + $0x28] sm:$0xff]  }
 0x10e   :  { %vm2549_vm3 = vmpackc.low %vm228_vm10, %vm221_vm7 }
 0x110   :  { %2853 = vmatmul.mubr.msk.bf16.vlgmr.msra.gmra.mxu1 %vm2539_vm15, %v3075_v12  ;;  %vm2551_vm15 = vmpackc.low %vm242_vm14, %vm235_vm4 }
 0x111   :  { %2856 = vmatprep.mubr.msk.bf16.mxu1 %vm2541_vm0, %v3075_v12  ;;  %vm68_vm0 = vcmask 64512  }
 0x118   :  { %2857 = vmatmul.mubr.msk.bf16.gmra.mxu1 %vm2543_vm6, %v3075_v12 }
 0x119   :  { %2860 = vmatprep.mubr.msk.bf16.mxu1 %vm2545_vm8, %v3075_v12 }
 0x120   :  { %2861 = vmatmul.mubr.msk.bf16.gmra.mxu1 %vm2547_vm12, %v3075_v12 }
 0x121   :  { %2864 = vmatprep.mubr.msk.bf16.mxu1 %vm2549_vm3, %v3075_v12  ;;  %v2642_v1 = vpop.f32.mrf.mxu1 }
 0x123   :  { %v2643_v5 = vpop.f32.mrf.mxu1 }
 0x124   :  { %v3979_v7 = vadd.f32 %v2643_v5, %v2642_v1  ;;  %v2589_v5 = vunpack.c.l.bf16 %v2600_v52 }
 0x125   :  { %v2645_v16 = vpop.f32.mrf.mxu1 }
 0x126   :  { %4350 = vst [vmem:[#allocation17_spill] sm:$0xff] %v3979_v7 }
 0x127   :  { %v2646_v17 = vpop.f32.mrf.mxu1 }
 0x128   :  { %2865 = vmatmul.mubr.msk.bf16.gmra.mxu1 %vm2551_vm15, %v3075_v12  ;;  %v2618_v11 = vpop.f32.mrf.mxu0  ;;  %v3982_v13 = vadd.f32 %v2646_v17, %v2645_v16  ;;  %v4321_v12 = vmov 0.0  }
 0x129   :  { %71 = vst.msk [vmem:[#allocation2 + $0x10] sm:$0xff] %vm68_vm0, %v4321_v12  ;;  %69 = vst.msk [vmem:[#allocation2] sm:$0xff] %vm68_vm0, %v4321_v12  ;;  %2868 = vmatprep.subr.mxu1 %v4321_v12  ;;  %2903 = vmatprep.subr.bf16.mxu0 %v4321_v12 }
 0x12a   :  { %4351 = vst [vmem:[#allocation18_spill] sm:$0xff] %v3982_v13  ;;  %v2619_v20 = vpop.f32.mrf.mxu0  ;;  %70 = vst.msk [vmem:[#allocation2 + $0x8] sm:$0xff] %vm68_vm0, %v4321_v12  ;;  %2900 = vmatprep.mubr.msk.f32.mxu1 %vm3077_vm1, %v4321_v12  ;;  %2919 = vmatprep.mubr.msk.bf16.mxu0 %vm3077_vm1, %v4321_v12 }
 0x12b   :  { %v3984_v21 = vadd.f32 %v2619_v20, %v2618_v11  ;;  %72 = vst.msk [vmem:[#allocation2 + $0x18] sm:$0xff] %vm68_vm0, %v4321_v12  ;;  %73 = vst.msk [vmem:[#allocation2 + $0x20] sm:$0xff] %vm68_vm0, %v4321_v12  ;;  %2869 = vmatpush3.msra.mxu1 %v2594_v54  ;;  %v2586_v11 = vunpack.c.h.bf16 %v2599_v58 }
 0x12c   :  { %v2621_v24 = vpop.f32.mrf.mxu0  ;;  %74 = vst.msk [vmem:[#allocation2 + $0x28] sm:$0xff] %vm68_vm0, %v4321_v12  ;;  %75 = vst.msk [vmem:[#allocation2 + $0x30] sm:$0xff] %vm68_vm0, %v4321_v12  ;;  %2870 = vmatprep.subr.mxu1 %v4321_v12 }
 0x12d   :  { %76 = vst.msk [vmem:[#allocation2 + $0x38] sm:$0xff] %vm68_vm0, %v4321_v12  ;;  %77 = vst.msk [vmem:[#allocation2 + $0x40] sm:$0xff] %vm68_vm0, %v4321_v12  ;;  %2871 = vmatpush3.msra.mxu1 %v2593_v40 }
 0x12e   :  { %v2622_v25 = vpop.f32.mrf.mxu0  ;;  %78 = vst.msk [vmem:[#allocation2 + $0x48] sm:$0xff] %vm68_vm0, %v4321_v12  ;;  %79 = vst.msk [vmem:[#allocation2 + $0x50] sm:$0xff] %vm68_vm0, %v4321_v12  ;;  %2872 = vmatprep.subr.mxu1 %v4321_v12 }
 0x12f   :  { %v3986_v28 = vadd.f32 %v2622_v25, %v2621_v24  ;;  %80 = vst.msk [vmem:[#allocation2 + $0x58] sm:$0xff] %vm68_vm0, %v4321_v12  ;;  %81 = vst.msk [vmem:[#allocation2 + $0x60] sm:$0xff] %vm68_vm0, %v4321_v12  ;;  %2873 = vmatpush3.msra.mxu1 %v2590_v41  ;;  %v2598_v24 = vld [vmem:[#allocation6 + $0x20] sm:$0xff]  }
 0x130   :  { %82 = vst.msk [vmem:[#allocation2 + $0x68] sm:$0xff] %vm68_vm0, %v4321_v12  ;;  %83 = vst.msk [vmem:[#allocation2 + $0x70] sm:$0xff] %vm68_vm0, %v4321_v12  ;;  %2874 = vmatprep.subr.mxu1 %v4321_v12 }
 0x131   :  { %84 = vst.msk [vmem:[#allocation2 + $0x78] sm:$0xff] %vm68_vm0, %v4321_v12  ;;  %2875 = vmatpush3.msra.mxu1 %v2589_v5 }
 0x132   :  { %2876 = vmatprep.subr.mxu1 %v4321_v12 }
 0x133   :  { %2877 = vmatpush3.msra.mxu1 %v2586_v11  ;;  %v2595_v11 = vld [vmem:[#allocation6 + $0x8] sm:$0xff]  }
 0x134   :  { %2878 = vmatprep.subr.mxu1 %v4321_v12 }
 0x13c   :  { %v2648_v6 = vpop.f32.mrf.mxu1 }
 0x13e   :  { %v2649_v8 = vpop.f32.mrf.mxu1 }
 0x13f   :  { %v3988_v29 = vadd.f32 %v2649_v8, %v2648_v6  ;;  %v2585_v6 = vunpack.c.l.bf16 %v2599_v58  ;;  %v2574_v58 = vunpack.c.h.bf16 %v2596_v51 }
 0x140   :  { %v2651_v32 = vpop.f32.mrf.mxu1 }
 0x141   :  { %2879 = vmatpush3.msra.mxu1 %v2585_v6  ;;  %v2573_v6 = vunpack.c.l.bf16 %v2596_v51 }
 0x142   :  { %v2652_v33 = vpop.f32.mrf.mxu1  ;;  %2880 = vmatprep.subr.mxu1 %v4321_v12 }
 0x143   :  { %v3990_v39 = vadd.f32 %v2652_v33, %v2651_v32  ;;  %v2582_v33 = vunpack.c.h.bf16 %v2598_v24 }
 0x144   :  { %v4030_v3 = vpop.f32.mrf.mxu0 }
 0x145   :  { %4352 = vst [vmem:[#allocation19_spill] sm:$0xff] %v3990_v39  ;;  %2881 = vmatpush3.msra.mxu1 %v2582_v33 }
 0x146   :  { %v4032_v4 = vpop.f32.mrf.mxu0  ;;  %2882 = vmatprep.subr.mxu1 %v4321_v12 }
 0x148   :  { %v4034_v9 = vpop.f32.mrf.mxu0 }
 0x14a   :  { %v4036_v10 = vpop.f32.mrf.mxu0 }
 0x158   :  { %v2654_v59 = vpop.f32.mrf.mxu1 }
 0x15a   :  { %v2655_v60 = vpop.f32.mrf.mxu1 }
 0x15b   :  { %v4026_v61 = vadd.f32 %v2655_v60, %v2654_v59  ;;  %v2597_v60 = vld [vmem:[#allocation6 + $0x18] sm:$0xff]  }
 0x15c   :  { %v2657_v62 = vpop.f32.mrf.mxu1  ;;  %v2577_v54 = vunpack.c.l.bf16 %v2597_v60 }
 0x15d   :  { %4353 = vst [vmem:[#allocation20_spill] sm:$0xff] %v4026_v61 }
 0x15e   :  { %v2658_v63 = vpop.f32.mrf.mxu1 }
 0x15f   :  { %v4028_v0 = vadd.f32 %v2658_v63, %v2657_v62  ;;  %v2581_v63 = vunpack.c.l.bf16 %v2598_v24 }
 0x160   :  { %v4038_v15 = vpop.f32.mrf.mxu0 }
 0x161   :  { %4354 = vst [vmem:[#allocation21_spill] sm:$0xff] %v4028_v0  ;;  %2883 = vmatpush3.msra.mxu1 %v2581_v63  ;;  %v2570_v63 = vunpack.c.h.bf16 %v2595_v11 }
 0x162   :  { %v4042_v37 = vpop.f32.mrf.mxu0  ;;  %2884 = vmatprep.subr.mxu1 %v4321_v12 }
 0x164   :  { %v4046_v27 = vpop.f32.mrf.mxu0 }
 0x166   :  { %v4048_v30 = vpop.f32.mrf.mxu0 }
 0x174   :  { %v2660_v14 = vpop.f32.mrf.mxu1 }
 0x176   :  { %v2661_v18 = vpop.f32.mrf.mxu1 }
 0x177   :  { %v4040_v19 = vadd.f32 %v2661_v18, %v2660_v14 }
 0x178   :  { %v2663_v22 = vpop.f32.mrf.mxu1 }
 0x179   :  { %4355 = vst [vmem:[#allocation22_spill] sm:$0xff] %v4040_v19 }
 0x17a   :  { %v2664_v23 = vpop.f32.mrf.mxu1 }
 0x17b   :  { %v4044_v26 = vadd.f32 %v2664_v23, %v2663_v22  ;;  %v2578_v22 = vunpack.c.h.bf16 %v2597_v60 }
 0x17c   :  { %v4050_v31 = vpop.f32.mrf.mxu0 }
 0x17d   :  { %4356 = vst [vmem:[#allocation23_spill] sm:$0xff] %v4044_v26  ;;  %2885 = vmatpush3.msra.mxu1 %v2578_v22  ;;  %v2564_v22 = vld [vmem:[#allocation6] sm:$0xff]   ;;  %v2569_v26 = vunpack.c.l.bf16 %v2595_v11 }
 0x17e   :  { %v4052_v34 = vpop.f32.mrf.mxu0  ;;  %2886 = vmatprep.subr.mxu1 %v4321_v12  ;;  %v2565_v13 = vunpack.c.l.bf16 %v2564_v22 }
 0x17f   :  { %2887 = vmatpush3.msra.mxu1 %v2577_v54  ;;  %v2566_v54 = vunpack.c.h.bf16 %v2564_v22 }
 0x180   :  { %v4054_v35 = vpop.f32.mrf.mxu0  ;;  %2888 = vmatprep.subr.mxu1 %v4321_v12 }
 0x181   :  { %2889 = vmatpush3.msra.mxu1 %v2574_v58 }
 0x182   :  { %v4058_v38 = vpop.f32.mrf.mxu0  ;;  %2890 = vmatprep.subr.mxu1 %v4321_v12 }
 0x183   :  { %2891 = vmatpush3.msra.mxu1 %v2573_v6 }
 0x184   :  { %2892 = vmatprep.subr.mxu1 %v4321_v12 }
 0x185   :  { %2893 = vmatpush3.msra.mxu1 %v2570_v63 }
 0x186   :  { %2894 = vmatprep.subr.mxu1 %v4321_v12 }
 0x187   :  { %2895 = vmatpush3.msra.mxu1 %v2569_v26 }
 0x188   :  { %2896 = vmatprep.subr.mxu1 %v4321_v12 }
 0x189   :  { %2897 = vmatpush3.msra.mxu1 %v2566_v54 }
 0x18a   :  { %2898 = vmatprep.subr.mxu1 %v4321_v12 }
 0x18b   :  { %2899 = vmatpush3.msra.mxu1 %v2565_v13  ;;  %v2626_v13 = vadd.f32 %v4032_v4, %v4030_v3 }
 0x190   :  { %v4056_v36 = vpop.f32.mrf.mxu1 }
 0x192   :  { %v4060_v42 = vpop.f32.mrf.mxu1 }
 0x194   :  { %v4062_v43 = vpop.f32.mrf.mxu1 }
 0x195   :  { %v4064_v44 = vpop.f32.mrf.mxu0 }
 0x196   :  { %v4066_v45 = vpop.f32.mrf.mxu1 }
 0x197   :  { %v4068_v46 = vpop.f32.mrf.mxu0  ;;  %v2687_v4 = vadd.f32 %v4066_v45, %v4062_v43 }
 0x198   :  { %v4070_v47 = vpop.f32.mrf.mxu1 }
 0x199   :  { %v4072_v48 = vpop.f32.mrf.mxu0 }
 0x19a   :  { %v4074_v49 = vpop.f32.mrf.mxu1 }
 0x19b   :  { %v4076_v50 = vpop.f32.mrf.mxu0 }
 0x19c   :  { %v4078_v53 = vpop.f32.mrf.mxu1 }
 0x19d   :  { %v4082_v55 = vpop.f32.mrf.mxu0 }
 0x19e   :  { %v4084_v56 = vpop.f32.mrf.mxu1 }
 0x19f   :  { %v4086_v57 = vpop.f32.mrf.mxu0 }
 0x1a0   :  { %v4089_v1 = vpop.f32.mrf.mxu1  ;;  %v2754_v3 = vadd.f32 %v4086_v57, %v4082_v55  ;;  %v2638_v55 = vadd.f32 %v4052_v34, %v4050_v31 }
 0x1a1   :  { %v4091_v16 = vpop.f32.mrf.mxu0 }
 0x1a2   :  { %v4094_v17 = vpop.f32.mrf.mxu1 }
 0x1a3   :  { %v4096_v20 = vpop.f32.mrf.mxu0 }
 0x1a4   :  { %v4099_v25 = vpop.f32.mrf.mxu1 }
 0x1a5   :  { %v4101_v8 = vpop.f32.mrf.mxu0 }
 0x1a6   :  { %v4104_v32 = vpop.f32.mrf.mxu1 }
 0x1a7   :  { %v4106_v59 = vpop.f32.mrf.mxu0 }
 0x1a8   :  { %v4109_v62 = vpop.f32.mrf.mxu1 }
 0x1a9   :  { %v4111_v14 = vpop.f32.mrf.mxu0 }
 0x1aa   :  { %v4114_v18 = vpop.f32.mrf.mxu1 }
 0x1ab   :  { %v4116_v23 = vpop.f32.mrf.mxu0  ;;  %v2702_v43 = vadd.f32 %v4114_v18, %v4109_v62  ;;  %v1353_v62 = vld [vmem:[#allocation2] sm:$0xff] }
 0x1ac   :  { %v4119_v52 = vpop.f32.mrf.mxu1 }
 0x1ad   :  { %v4121_v40 = vpop.f32.mrf.mxu0  ;;  %v1525_v18 = vadd.f32 %v2702_v43, %v2638_v55 }
 0x1ae   :  { %v4124_v41 = vpop.f32.mrf.mxu1 }
 0x1af   :  { %v4126_v5 = vpop.f32.mrf.mxu0 }
 0x1b0   :  { %v4129_v24 = vpop.f32.mrf.mxu1 }
 0x1b1   :  { %v4131_v33 = vpop.f32.mrf.mxu0 }
 0x1b2   :  { %v4134_v60 = vpop.f32.mrf.mxu1 }
 0x1b3   :  { %v4136_v2 = vpop.f32.mrf.mxu0 }
 0x1b4   :  { %v4139_v0 = vpop.f32.mrf.mxu1 }
 0x1b5   :  { %4357 = vst [vmem:[#allocation24_spill] sm:$0xff] %v4139_v0  ;;  %v4141_v61 = vpop.f32.mrf.mxu0 }
 0x1b6   :  { %4358 = vst [vmem:[#allocation25_spill] sm:$0xff] %v4141_v61  ;;  %v4144_v51 = vpop.f32.mrf.mxu1 }
 0x1b7   :  { %4359 = vst [vmem:[#allocation26_spill] sm:$0xff] %v4144_v51  ;;  %v4146_v19 = vpop.f32.mrf.mxu0  ;;  %v2690_v51 = vadd.f32 %v4074_v49, %v4070_v47 }
 0x1b8   :  { %4360 = vst [vmem:[#allocation27_spill] sm:$0xff] %v4146_v19  ;;  %v4149_v58 = vpop.f32.mrf.mxu1 }
 0x1b9   :  { %v4151_v39 = vpop.f32.mrf.mxu0 }
 0x1ba   :  { %4361 = vst [vmem:[#allocation28_spill] sm:$0xff] %v4151_v39  ;;  %v4154_v11 = vpop.f32.mrf.mxu1 }
 0x1bb   :  { %v4156_v6 = vpop.f32.mrf.mxu0 }
 0x1bc   :  { %4362 = vst [vmem:[#allocation29_spill] sm:$0xff] %v4156_v6  ;;  %v4159_v63 = vpop.f32.mrf.mxu1 }
 0x1bd   :  { %v4161_v19 = vpop.f32.mrf.mxu0 }
 0x1be   :  { %v4163_v61 = vpop.f32.mrf.mxu1 }
 0x1bf   :  { %4363 = vst [vmem:[#allocation30_spill] sm:$0xff] %v4163_v61  ;;  %v4165_v26 = vpop.f32.mrf.mxu0 }
 0x1c0   :  { %v4167_v22 = vpop.f32.mrf.mxu1  ;;  %v2778_v55 = vadd.f32 %v4165_v26, %v4161_v19  ;;  %v4373_v26 = vld [vmem:[#allocation25_spill] sm:$0xff] }
 0x1c1   :  { %4364 = vst [vmem:[#allocation31_spill] sm:$0xff] %v4167_v22  ;;  %v4169_v39 = vpop.f32.mrf.mxu0  ;;  %v2684_v22 = vadd.f32 %v4060_v42, %v4056_v36  ;;  %v2757_v42 = vadd.f32 %v4096_v20, %v4091_v16  ;;  %v2696_v16 = vadd.f32 %v4094_v17, %v4089_v1  ;;  %v2641_v20 = vadd.f32 %v4058_v38, %v4054_v35  ;;  %v1356_v35 = vld [vmem:[#allocation2 + $0x18] sm:$0xff] }
 0x1c2   :  { %v4171_v7 = vpop.f32.mrf.mxu1  ;;  %v2699_v1 = vadd.f32 %v4104_v32, %v4099_v25  ;;  %v2769_v25 = vadd.f32 %v4136_v2, %v4131_v33 }
 0x1c3   :  { %4365 = vst [vmem:[#allocation32_spill] sm:$0xff] %v4171_v7  ;;  %v4173_v54 = vpop.f32.mrf.mxu0  ;;  %v2629_v7 = vadd.f32 %v4036_v10, %v4034_v9  ;;  %v1501_v36 = vadd.f32 %v2684_v22, %v3984_v21  ;;  %v2748_v9 = vadd.f32 %v4068_v46, %v4064_v44  ;;  %v2751_v21 = vadd.f32 %v4076_v50, %v4072_v48 }
 0x1c4   :  { %4366 = vst [vmem:[#allocation33_spill] sm:$0xff] %v4173_v54  ;;  %v4175_v6 = vpop.f32.mrf.mxu1  ;;  %v1509_v54 = vadd.f32 %v2690_v51, %v2626_v13  ;;  %v2632_v46 = vadd.f32 %v4042_v37, %v4038_v15  ;;  %v2766_v51 = vadd.f32 %v4126_v5, %v4121_v40  ;;  %v2635_v37 = vadd.f32 %v4048_v30, %v4046_v27  ;;  %v1354_v30 = vld [vmem:[#allocation2 + $0x8] sm:$0xff] }
 0x1c5   :  { %4367 = vst [vmem:[#allocation34_spill] sm:$0xff] %v4175_v6  ;;  %v4183_v0 = vpop.f32.mrf.mxu0  ;;  %v2693_v6 = vadd.f32 %v4084_v56, %v4078_v53  ;;  %v1504_v56 = vadd.f32 %v2687_v4, %v3986_v28  ;;  %v1598_v34 = vadd.f32 %v2748_v9, %v1501_v36  ;;  %v2705_v28 = vadd.f32 %v4124_v41, %v4119_v52  ;;  %v1359_v9 = vld [vmem:[#allocation2 + $0x30] sm:$0xff] }
 0x1c6   :  { %v4177_v12 = vpop.f32.mrf.mxu1  ;;  %v1606_v45 = vadd.f32 %v2754_v3, %v1509_v54  ;;  %v1517_v41 = vadd.f32 %v2696_v16, %v2632_v46  ;;  %v2760_v22 = vadd.f32 %v4106_v59, %v4101_v8  ;;  %v2714_v27 = vadd.f32 %v4154_v11, %v4149_v58  ;;  %v4369_v43 = vld [vmem:[#allocation30_spill] sm:$0xff]  ;;  %v1360_v16 = vld [vmem:[#allocation2 + $0x38] sm:$0xff] }
 0x1c7   :  { %4368 = vst [vmem:[#allocation35_spill] sm:$0xff] %v4177_v12  ;;  %v4199_v47 = vpop.f32.mrf.mxu0  ;;  %v1512_v10 = vadd.f32 %v2693_v6, %v2629_v7  ;;  %v1355_v7 = vld [vmem:[#allocation2 + $0x10] sm:$0xff]  ;;  %v1601_v52 = vadd.f32 %v2751_v21, %v1504_v56  ;;  %v1528_v54 = vadd.f32 %v2705_v28, %v2641_v20  ;;  %v1622_v4 = vadd.f32 %v2766_v51, %v1525_v18  ;;  %v4372_v20 = vld [vmem:[#allocation17_spill] sm:$0xff] }
 0x1c8   :  { %v4185_v61 = vpop.f32.mrf.mxu1  ;;  %v1520_v36 = vadd.f32 %v2699_v1, %v2635_v37  ;;  %v2763_v8 = vadd.f32 %v4116_v23, %v4111_v14  ;;  %v2708_v58 = vadd.f32 %v4134_v60, %v4129_v24  ;;  %v1614_v2 = vadd.f32 %v2760_v22, %v1517_v41  ;;  %v1357_v14 = vld [vmem:[#allocation2 + $0x20] sm:$0xff]  ;;  %v4370_v60 = vld [vmem:[#allocation24_spill] sm:$0xff]  ;;  %v4374_v28 = vld [vmem:[#allocation27_spill] sm:$0xff] }
 0x1c9   :  { %v4217_v57 = vpop.f32.mrf.mxu0  ;;  %v1609_v50 = vadd.f32 %v2757_v42, %v1512_v10  ;;  %v1541_v33 = vadd.f32 %v2714_v27, %v3988_v29  ;;  %v1625_v24 = vadd.f32 %v2769_v25, %v1528_v54  ;;  %v4379_v27 = vld [vmem:[#allocation28_spill] sm:$0xff] }
 0x1ca   :  { %v4193_v12 = vpop.f32.mrf.mxu1  ;;  %v1617_v29 = vadd.f32 %v2763_v8, %v1520_v36  ;;  %v1533_v19 = vadd.f32 %v2708_v58, %v4372_v20 }
 0x1cb   :  { %v4233_v17 = vpop.f32.mrf.mxu0  ;;  %v2726_v51 = vadd.f32 %v4193_v12, %v4185_v61  ;;  %v1638_v1 = vadd.f32 %v2778_v55, %v1541_v33  ;;  %v4380_v12 = vld [vmem:[#allocation29_spill] sm:$0xff]  ;;  %v2951_v55 = vld [vmem:[#allocation8 + $0x28] sm:$0xff]  }
 0x1cc   :  { %v4201_v49 = vpop.f32.mrf.mxu1  ;;  %v2775_v61 = vadd.f32 %v4380_v12, %v4379_v27 }
 0x1cd   :  { %v2788_v59 = vpop.f32.mrf.mxu0 }
 0x1ce   :  { %v4208_v53 = vpop.f32.mrf.mxu1 }
 0x1cf   :  { %v2789_v46 = vpop.f32.mrf.mxu0 }
 0x1d0   :  { %v2854_v44 = vpop.f32.mrf.mxu1  ;;  %v2790_v58 = vadd.f32 %v2789_v46, %v2788_v59 }
 0x1d1   :  { %v1703_v31 = vadd.f32 %v2854_v44, %v1606_v45  ;;  %v2717_v45 = vadd.f32 %v4369_v43, %v4159_v63  ;;  %v2772_v63 = vadd.f32 %v4374_v28, %v4373_v26  ;;  %v2952_v28 = vld [vmem:[#allocation8 + $0x20] sm:$0xff]  }
 0x1d2   :  { %v1694_v48 = vpop.f32.mrf.mxu1 }
 0x1d3   :  { %v1759_v6 = vadd.f32 %v1703_v31, %v1355_v7  ;;  %v1695_v15 = vadd.f32 %v1694_v48, %v1598_v34  ;;  %v4371_v7 = vld [vmem:[#allocation26_spill] sm:$0xff]  ;;  %v2949_v34 = vld [vmem:[#allocation8 + $0x38] sm:$0xff]   ;;  %v1630_v8 = vadd.f32 %v2772_v63, %v1533_v19 }
 0x1d4   :  { %v2855_v38 = vpop.f32.mrf.mxu1  ;;  %v2711_v44 = vadd.f32 %v4371_v7, %v4370_v60  ;;  %2904 = vmatpush3.bf16.msra.mxu0 %v2949_v34  ;;  %v1362_v34 = vld [vmem:[#allocation2 + $0x48] sm:$0xff] }
 0x1d5   :  { %1776 = vst.msk [vmem:[#allocation2 + $0x10] sm:$0xff] %vm68_vm0, %v1759_v6  ;;  %v1757_v40 = vadd.f32 %v1695_v15, %v1353_v62  ;;  %v1706_v5 = vadd.f32 %v2855_v38, %v1609_v50  ;;  %v4375_v50 = vld [vmem:[#allocation19_spill] sm:$0xff]  ;;  %v1358_v6 = vld [vmem:[#allocation2 + $0x28] sm:$0xff]  ;;  %v4376_v38 = vld [vmem:[#allocation33_spill] sm:$0xff] }
 0x1d6   :  { %v1697_v13 = vpop.f32.mrf.mxu1  ;;  %v1544_v18 = vadd.f32 %v2717_v45, %v4375_v50  ;;  %v1367_v50 = vld [vmem:[#allocation2 + $0x70] sm:$0xff] }
 0x1d7   :  { %1774 = vst.msk [vmem:[#allocation2] sm:$0xff] %vm68_vm0, %v1757_v40  ;;  %v1760_v32 = vadd.f32 %v1706_v5, %v1356_v35  ;;  %v1698_v3 = vadd.f32 %v1697_v13, %v1601_v52  ;;  %v2950_v35 = vld [vmem:[#allocation8 + $0x30] sm:$0xff]   ;;  %v2781_v52 = vadd.f32 %v4376_v38, %v4169_v39  ;;  %v4377_v40 = vmov 0.0   ;;  %v4378_v5 = vld [vmem:[#allocation18_spill] sm:$0xff]  ;;  %v1363_v13 = vld [vmem:[#allocation2 + $0x50] sm:$0xff] }
 0x1d8   :  { %v2858_v10 = vpop.f32.mrf.mxu1  ;;  %2905 = vmatprep.subr.bf16.mxu0 %v4377_v40  ;;  %v1536_v54 = vadd.f32 %v2711_v44, %v4378_v5  ;;  %v2784_v44 = vadd.f32 %v4199_v47, %v4183_v0  ;;  %v4388_v0 = vld [vmem:[#allocation21_spill] sm:$0xff] }
 0x1d9   :  { %1777 = vst.msk [vmem:[#allocation2 + $0x18] sm:$0xff] %vm68_vm0, %v1760_v32  ;;  %v1758_v11 = vadd.f32 %v1698_v3, %v1354_v30  ;;  %v1719_v42 = vadd.f32 %v2858_v10, %v1622_v4  ;;  %v2791_v30 = vpop.f32.mrf.mxu0  ;;  %v4381_v32 = vld [vmem:[#allocation31_spill] sm:$0xff]  ;;  %v4382_v3 = vld [vmem:[#allocation32_spill] sm:$0xff]  ;;  %2906 = vmatpush3.bf16.msra.mxu0 %v2950_v35 }
 0x1da   :  { %v1710_v23 = vpop.f32.mrf.mxu1  ;;  %v2720_v4 = vadd.f32 %v4382_v3, %v4381_v32  ;;  %2907 = vmatprep.subr.bf16.mxu0 %v4377_v40 }
 0x1db   :  { %1775 = vst.msk [vmem:[#allocation2 + $0x8] sm:$0xff] %vm68_vm0, %v1758_v11  ;;  %v1763_v56 = vadd.f32 %v1719_v42, %v1359_v9  ;;  %v1711_v21 = vadd.f32 %v1710_v23, %v1614_v2  ;;  %v4383_v9 = vld [vmem:[#allocation22_spill] sm:$0xff]  ;;  %v2729_v11 = vadd.f32 %v4208_v53, %v4201_v49  ;;  %v1361_v42 = vld [vmem:[#allocation2 + $0x40] sm:$0xff]  ;;  %v2792_v59 = vpop.f32.mrf.mxu0  ;;  %v1633_v49 = vadd.f32 %v2775_v61, %v1536_v54  ;;  %v4386_v53 = vld [vmem:[#allocation20_spill] sm:$0xff] }
 0x1dc   :  { %v2859_v31 = vpop.f32.mrf.mxu1  ;;  %v1557_v10 = vadd.f32 %v2726_v51, %v4383_v9  ;;  %v4384_v23 = vld [vmem:[#allocation34_spill] sm:$0xff]  ;;  %v1549_v7 = vadd.f32 %v2720_v4, %v4386_v53  ;;  %v1795_v19 = vld [vmem:[#allocation2 + $0x10] sm:$0xff]  ;;  %v2793_v63 = vadd.f32 %v2792_v59, %v2791_v30  ;;  %v2787_v51 = vadd.f32 %v4233_v17, %v4217_v57  ;;  %v1368_v54 = vld [vmem:[#allocation2 + $0x78] sm:$0xff] }
 0x1dd   :  { %1780 = vst.msk [vmem:[#allocation2 + $0x30] sm:$0xff] %vm68_vm0, %v1763_v56  ;;  %v1761_v62 = vadd.f32 %v1711_v21, %v1357_v14  ;;  %v1722_v48 = vadd.f32 %v2859_v31, %v1625_v24  ;;  %v1641_v14 = vadd.f32 %v2781_v52, %v1544_v18  ;;  %v4385_v56 = vld [vmem:[#allocation35_spill] sm:$0xff]  ;;  %v1364_v24 = vld [vmem:[#allocation2 + $0x58] sm:$0xff]  ;;  %2908 = vmatpush3.bf16.msra.mxu0 %v2951_v55  ;;  %v2953_v52 = vld [vmem:[#allocation8 + $0x18] sm:$0xff]  }
 0x1de   :  { %v1713_v15 = vpop.f32.mrf.mxu1  ;;  %v1793_v37 = vld [vmem:[#allocation2] sm:$0xff]  ;;  %v2723_v21 = vadd.f32 %v4385_v56, %v4384_v23  ;;  %v4387_v31 = vld [vmem:[#allocation23_spill] sm:$0xff]  ;;  %v1654_v26 = vadd.f32 %v2790_v58, %v1557_v10  ;;  %2909 = vmatprep.subr.bf16.mxu0 %v4377_v40  ;;  %v1366_v61 = vld [vmem:[#allocation2 + $0x68] sm:$0xff] }
 0x1df   :  { %1778 = vst.msk [vmem:[#allocation2 + $0x20] sm:$0xff] %vm68_vm0, %v1761_v62  ;;  %v1764_v41 = vadd.f32 %v1722_v48, %v1360_v16  ;;  %v1714_v22 = vadd.f32 %v1713_v15, %v1617_v29  ;;  %1848 = vxpose.xlu0.b32.start [1/16] (narrow) %v1793_v37, 8  ;;  %v1560_v29 = vadd.f32 %v2729_v11, %v4387_v31  ;;  %v2956_v9 = vld [vmem:[#allocation8] sm:$0xff]  }
 0x1e0   :  { %v2862_v25 = vpop.f32.mrf.mxu1  ;;  %v1552_v47 = vadd.f32 %v2723_v21, %v4388_v0  ;;  %v1646_v37 = vadd.f32 %v2784_v44, %v1549_v7  ;;  %v1796_v38 = vld [vmem:[#allocation2 + $0x18] sm:$0xff] }
 0x1e1   :  { %1781 = vst.msk [vmem:[#allocation2 + $0x38] sm:$0xff] %vm68_vm0, %v1764_v41  ;;  %v1762_v39 = vadd.f32 %v1714_v22, %v1358_v6  ;;  %v1735_v36 = vadd.f32 %v2862_v25, %v1638_v1  ;;  %v1365_v1 = vld [vmem:[#allocation2 + $0x60] sm:$0xff]  ;;  %2910 = vmatpush3.bf16.msra.mxu0 %v2952_v28  ;;  %v1657_v5 = vadd.f32 %v2793_v63, %v1560_v29  ;;  %v2954_v25 = vld [vmem:[#allocation8 + $0x10] sm:$0xff]  }
 0x1e2   :  { %v1726_v2 = vpop.f32.mrf.mxu1  ;;  %v1794_v33 = vld [vmem:[#allocation2 + $0x8] sm:$0xff]  ;;  %2911 = vmatprep.subr.bf16.mxu0 %v4377_v40  ;;  %v1649_v12 = vadd.f32 %v2787_v51, %v1552_v47 }
 0x1e3   :  { %1779 = vst.msk [vmem:[#allocation2 + $0x28] sm:$0xff] %vm68_vm0, %v1762_v39  ;;  %v1767_v43 = vadd.f32 %v1735_v36, %v1363_v13  ;;  %v1727_v45 = vadd.f32 %v1726_v2, %v1630_v8  ;;  %1849 = vxpose.xlu0.b32.cont [2/16] (narrow) %v1794_v33, 8  ;;  %v2955_v36 = vld [vmem:[#allocation8 + $0x8] sm:$0xff]  }
 0x1e4   :  { %v2863_v60 = vpop.f32.mrf.mxu1  ;;  %v1799_v8 = vld [vmem:[#allocation2 + $0x30] sm:$0xff] }
 0x1e5   :  { %1784 = vst.msk [vmem:[#allocation2 + $0x50] sm:$0xff] %vm68_vm0, %v1767_v43  ;;  %v1765_v46 = vadd.f32 %v1727_v45, %v1361_v42  ;;  %v1738_v16 = vadd.f32 %v2863_v60, %v1641_v14  ;;  %2912 = vmatpush3.bf16.msra.mxu0 %v2953_v52  ;;  %v2553_v14 = vld [vmem:[%s4315_s2] ss:$0 sm:$0xff]  ;;  %s3078_s2 = smov [#allocation9]  }
 0x1e6   :  { %v1729_v20 = vpop.f32.mrf.mxu1  ;;  %v1797_v13 = vld [vmem:[#allocation2 + $0x20] sm:$0xff]  ;;  %2913 = vmatprep.subr.bf16.mxu0 %v4377_v40  ;;  %s2081_s16 = sshll.u32 %s3078_s2, 4  ;;  %s2082_s16 = int_to_ptr.vmem [resolvable:$true] %s2081_s16 }
 0x1e7   :  { %1782 = vst.msk [vmem:[#allocation2 + $0x40] sm:$0xff] %vm68_vm0, %v1765_v46  ;;  %v1768_v62 = vadd.f32 %v1738_v16, %v1364_v24  ;;  %v1730_v48 = vadd.f32 %v1729_v20, %v1633_v49  ;;  %1850 = vxpose.xlu0.b32.cont [3/16] (narrow) %v1795_v19, 8  ;;  %v2554_v24 = vld [vmem:[%s4317_s4] ss:$0 sm:$0xff]  ;;  %v4389_v49 = vld [vmem:[#allocation16_spill] sm:$0xff]  ;;  %s3022_s4 = scalar_lea.vmem %s2082_s16, 128  ;;  %p3027_p2 = scmp.lt.s32.totalorder %s2082_s16, %s2082_s16 }
 0x1e8   :  { %v2866_v18 = vpop.f32.mrf.mxu1  ;;  %v1800_v10 = vld [vmem:[#allocation2 + $0x38] sm:$0xff]  ;;  %vm2063_vm2 = vcmp.lt.s32.totalorder %v4389_v49, 8  ;;  %p3023_p1 = scmp.ne.s32.totalorder %s2082_s16, %s3022_s4  ;;  %p3028_p3 = scmp.lt.s32.totalorder %s3022_s4, %s3022_s4 }
 0x1e9   :  { %1785 = vst.msk [vmem:[#allocation2 + $0x58] sm:$0xff] %vm68_vm0, %v1768_v62  ;;  %v1766_v6 = vadd.f32 %v1730_v48, %v1362_v34  ;;  %v1751_v15 = vadd.f32 %v2866_v18, %v1654_v26  ;;  %2914 = vmatpush3.bf16.msra.mxu0 %v2954_v25 }
 0x1ea   :  { %v1742_v35 = vpop.f32.mrf.mxu1  ;;  %v1798_v39 = vld [vmem:[#allocation2 + $0x28] sm:$0xff]  ;;  %2915 = vmatprep.subr.bf16.mxu0 %v4377_v40  ;;  %p3029_p4 = por %p3028_p3, %p3027_p2 }
 0x1eb   :  { %1783 = vst.msk [vmem:[#allocation2 + $0x48] sm:$0xff] %vm68_vm0, %v1766_v6  ;;  %v1771_v41 = vadd.f32 %v1751_v15, %v1367_v50  ;;  %v1743_v22 = vadd.f32 %v1742_v35, %v1646_v37  ;;  %1851 = vxpose.xlu0.b32.cont [4/16] (narrow) %v1796_v38, 8 }
 0x1ec   :  { %v2867_v57 = vpop.f32.mrf.mxu1  ;;  %v1803_v42 = vld [vmem:[#allocation2 + $0x50] sm:$0xff]  ;;  %p3030_p5 = pnand %p3029_p4, %p3023_p1 }
 0x1ed   :  { %1788 = vst.msk [vmem:[#allocation2 + $0x70] sm:$0xff] %vm68_vm0, %v1771_v41  ;;  %v1769_v17 = vadd.f32 %v1743_v22, %v1365_v1  ;;  %v1754_v27 = vadd.f32 %v2867_v57, %v1657_v5  ;;  %2916 = vmatpush3.bf16.msra.mxu0 %v2955_v36 }
 0x1ee   :  { %v1745_v30 = vpop.f32.mrf.mxu1  ;;  %2917 = vmatprep.subr.bf16.mxu0 %v4377_v40  ;;  %v1801_v58 = vld [vmem:[#allocation2 + $0x40] sm:$0xff] }
 0x1ef   :  { %1786 = vst.msk [vmem:[#allocation2 + $0x60] sm:$0xff] %vm68_vm0, %v1769_v17  ;;  %v1772_v32 = vadd.f32 %v1754_v27, %v1368_v54  ;;  %v1746_v3 = vadd.f32 %v1745_v30, %v1649_v12  ;;  %1852 = vxpose.xlu0.b32.cont [5/16] (narrow) %v1797_v13, 8 }
 0x1f0   :  { %v1804_v2 = vld [vmem:[#allocation2 + $0x58] sm:$0xff] }
 0x1f1   :  { %1789 = vst.msk [vmem:[#allocation2 + $0x78] sm:$0xff] %vm68_vm0, %v1772_v32  ;;  %v1770_v4 = vadd.f32 %v1746_v3, %v1366_v61  ;;  %2918 = vmatpush3.bf16.msra.mxu0 %v2956_v9 }
 0x1f2   :  { %v1802_v11 = vld [vmem:[#allocation2 + $0x48] sm:$0xff] }
 0x1f3   :  { %1787 = vst.msk [vmem:[#allocation2 + $0x68] sm:$0xff] %vm68_vm0, %v1770_v4  ;;  %1853 = vxpose.xlu0.b32.cont [6/16] (narrow) %v1798_v39, 8 }
 0x1f4   :  { %v1807_v43 = vld [vmem:[#allocation2 + $0x70] sm:$0xff] }
 0x1f6   :  { %v1805_v33 = vld [vmem:[#allocation2 + $0x60] sm:$0xff] }
 0x1f7   :  { %1854 = vxpose.xlu0.b32.cont [7/16] (narrow) %v1799_v8, 8 }
 0x1f8   :  { %v1808_v45 = vld [vmem:[#allocation2 + $0x78] sm:$0xff] }
 0x1fa   :  { %v1806_v55 = vld [vmem:[#allocation2 + $0x68] sm:$0xff] }
 0x1fb   :  { %1855 = vxpose.xlu0.b32.cont [8/16] (narrow) %v1800_v10, 8 }
 0x1ff   :  { %1856 = vxpose.xlu0.b32.cont [9/16] (narrow) %v1801_v58, 8 }
 0x203   :  { %1857 = vxpose.xlu0.b32.cont [10/16] (narrow) %v1802_v11, 8 }
 0x207   :  { %1858 = vxpose.xlu0.b32.cont [11/16] (narrow) %v1803_v42, 8 }
 0x20b   :  { %1859 = vxpose.xlu0.b32.cont [12/16] (narrow) %v1804_v2, 8 }
 0x20f   :  { %1860 = vxpose.xlu0.b32.cont [13/16] (narrow) %v1805_v33, 8 }
 0x213   :  { %1861 = vxpose.xlu0.b32.cont [14/16] (narrow) %v1806_v55, 8 }
 0x217   :  { %1862 = vxpose.xlu0.b32.cont [15/16] (narrow) %v1807_v43, 8 }
 0x21b   :  { %1863 = vxpose.xlu0.b32.end [16/16] (narrow) %v1808_v45, 8 }
 0x25b   :  { %v1864_v40 = vpop.trf.xlu0 }
 0x25c   :  { %2901 = vmatmul.mubr.f32.vlgmr.msra.gmra.mxu1 %v1864_v40 }
 0x31c   :  { %v1946_v23 = vpop.f32.mrf.mxu1 }
 0x31d   :  { %v1947_v56 = vadd.f32 %v2553_v14, %v1946_v23 }
 0x31e   :  { %v2902_v21 = vpop.f32.mrf.mxu1 }
 0x31f   :  { %v1950_v59 = vpack.c.bf16 %v1947_v56, %v1947_v56 }
 0x321   :  { %2920 = vmatmul.mubr.bf16.vlgmr.msra.gmra.mxu0 %v1950_v59 }
 0x3e1   :  { %v2056_v60 = vpop.f32.mrf.mxu0 }
 0x3e2   :  { %v2057_v53 = vadd.f32 %v2554_v24, %v2056_v60 }
 0x3e3   :  { %v2921_v7 = vpop.f32.mrf.mxu0 }
 0x3e4   :  { %2062 = vst [vmem:[#allocation9] sm:$0xff] %v2057_v53  ;;  %v2064_v44 = vsel %vm2063_vm2, %v2057_v53, -1e+30 }
 0x3e5   :  { %2065 = vmax.xlane.f32.xlu1 %v2064_v44  ;;  %v2059_v46 = vpop.f32.mrf.mxu0 }
 0x3e7   :  { %v2922_v16 = vpop.f32.mrf.mxu0 }
 0x46e   :  { %v2066_v31 = vpop.xlane.xlu1 %2065 }
 0x46f   :  { %v2067_v29 = vsub.f32 %v2064_v44, %v2066_v31 }
 0x471   :  { %v2068_v34 = vmul.f32 1.442695, %v2067_v29 }
 0x473   :  { %2957 = vpow2.f32 %v2068_v34 }
 0x480   :  { %v2958_v20 = vpop.eup %2957 }
 0x481   :  { %2070 = vadd.xlane.f32.xlu1 %v2958_v20 }
 0x482   :  { %3033 = shalt.err (!%p3030_p5)
}
 0x483   :  { %2084 = dma.vmem_to_hbm [thread:$0]  %s2082_s16, 128, %s4318_s5, [#allocation5]  }
 0x484   :  { %s3079_s19 = smov [#allocation10]  }
 0x485   :  { %s2091_s20 = sshll.u32 %s3079_s19, 4  ;;  %s2092_s20 = int_to_ptr.vmem [resolvable:$true] %s2091_s20 }
 0x486   :  { %s3042_s21 = scalar_lea.vmem %s2092_s20, 128  ;;  %p3047_p7 = scmp.lt.s32.totalorder %s2092_s20, %s2092_s20 }
 0x487   :  { %p3043_p6 = scmp.ne.s32.totalorder %s2092_s20, %s3042_s21  ;;  %p3048_p8 = scmp.lt.s32.totalorder %s3042_s21, %s3042_s21 }
 0x489   :  { %p3049_p9 = por %p3048_p8, %p3047_p7 }
 0x48b   :  { %p3050_p10 = pnand %p3049_p9, %p3043_p6 }
 0x50a   :  { %v2071_v19 = vpop.xlane.xlu1 %2070 }
 0x50b   :  { %2959 = vrcp.f32 %v2071_v19 }
 0x518   :  { %v2960_v26 = vpop.eup %2959 }
 0x519   :  { %v2073_v28 = vmul.f32 %v2960_v26, %v2958_v20 }
 0x51b   :  { %2074 = vst [vmem:[#allocation10] sm:$0xff] %v2073_v28 }
 0x51c   :  { %3053 = shalt.err (!%p3050_p10)
}
 0x51d   :  { %2094 = dma.vmem_to_hbm [thread:$0]  %s2092_s20, 128, %s4319_s6, [#allocation11]  }
 0x51e   :  { %3066 = dma.done.wait [#allocation5], 128  }
 0x51f   :  { %3067 = vsyncadd [#allocation5], 4294967168 }
 0x520   :  { %3068 = dma.done.wait [#allocation11], 128  }
 0x521   :  { %3069 = vsyncadd [#allocation11], 4294967168 }
 0x522   :  { %2101 = vsyncpa [#allocation4], 1 }
 0x523   :  { %2102 = vsyncpa [#allocation7], 1 }
 0x524   :  { %2103 = vsyncpa [#allocation5], 1 }
 0x525   :  { %2104 = vsyncpa [#allocation11], 1 }

</bundles_post_ra>
